<compile_context>
chip_gen: v5e
topology: v5e:2x2
jax: 0.10.0
libtpu: 0.0.40
codegen_flags: <defaults>
</compile_context>

<pallas_src>
import functools

import jax
import jax.numpy as jnp
from jax.experimental import pallas as pl
from jax.experimental.pallas import tpu as pltpu

EPS = 1e-5  # nn.LayerNorm default


def _layernorm(x, gamma, beta):
    mu = jnp.mean(x, axis=-1, keepdims=True)
    xc = x - mu
    var = jnp.mean(xc * xc, axis=-1, keepdims=True)
    return xc * jax.lax.rsqrt(var + EPS) * gamma + beta


def fused_threats_kernel(x_ref, wqkv_ref, bqkv_ref, wo_ref, bo_ref,
                         g1_ref, bt1_ref, w1_ref, bb1_ref,
                         w2_ref, bb2_ref, g2_ref, bt2_ref,
                         o_ref, x_sc, *, num_heads):
    layer = pl.program_id(1)
    n_layers = pl.num_programs(1)

    # Layer 0: pull the input block into the resident f32 activation scratch.
    @pl.when(layer == 0)
    def _():
        x_sc[...] = x_ref[...].astype(jnp.float32)

    Bb, S, E = x_sc.shape
    nh = num_heads
    dh = E // nh
    BS = Bb * S
    scale = 1.0 / float(dh) ** 0.5

    x2d = x_sc[...].reshape(BS, E)                       # (B*S, E) f32
    xb = x2d.astype(jnp.bfloat16)

    # --- MultiheadAttention: fused QKV projection on folded (B*S, E) rows ----
    qkv = jnp.dot(xb, wqkv_ref[0],
                  preferred_element_type=jnp.float32) + bqkv_ref[0]  # (BS, 3E)
    q, k, v = qkv[:, :E], qkv[:, E:2 * E], qkv[:, 2 * E:]

    def heads(t):  # (B*S, E) f32 -> (B*nh, S, dh) bf16
        return jnp.stack(
            [t[b * S:(b + 1) * S, h * dh:(h + 1) * dh]
             for b in range(Bb) for h in range(nh)],
            axis=0).astype(jnp.bfloat16)

    qh, kh, vh = heads(q), heads(k), heads(v)

    s = jnp.einsum("bqd,bkd->bqk", qh, kh,
                   preferred_element_type=jnp.float32) * scale   # (B*nh, S, S)
    m = jnp.max(s, axis=-1, keepdims=True)
    p = jnp.exp(s - m)
    p = p * pl.reciprocal(jnp.sum(p, axis=-1, keepdims=True), approx=True)
    ah = jnp.einsum("bqk,bkd->bqd", p.astype(jnp.bfloat16), vh,
                    preferred_element_type=jnp.float32)          # (B*nh, S, dh)

    # merge heads back to (B*S, E)
    attn = jnp.concatenate(
        [jnp.concatenate([ah[b * nh + h] for h in range(nh)], axis=-1)
         for b in range(Bb)], axis=0)
    attn = jnp.dot(attn.astype(jnp.bfloat16), wo_ref[0],
                   preferred_element_type=jnp.float32) + bo_ref[0]

    # --- residual + LayerNorm 1 ----------------------------------------------
    x1 = _layernorm(x2d + attn, g1_ref[0], bt1_ref[0])

    # --- FFN: Linear -> ReLU -> Linear ----------------------------------------
    h1 = jnp.dot(x1.astype(jnp.bfloat16), w1_ref[0],
                 preferred_element_type=jnp.float32) + bb1_ref[0]
    h1 = jnp.maximum(h1, 0.0)
    h2 = jnp.dot(h1.astype(jnp.bfloat16), w2_ref[0],
                 preferred_element_type=jnp.float32) + bb2_ref[0]

    # --- residual + LayerNorm 2 ------------------------------------------------
    x2 = _layernorm(x1 + h2, g2_ref[0], bt2_ref[0])               # (BS, E) f32
    x_sc[...] = x2.reshape(Bb, S, E)

    # --- fused AdaptiveAvgPool1d(1) epilogue on the last layer ------------------
    @pl.when(layer == n_layers - 1)
    def _():
        o_ref[...] = jnp.mean(x2.reshape(Bb, S, E), axis=-1).astype(o_ref.dtype)


def threats_nn(x, p, num_heads, b_block=None):
    """Runs the whole ThreatsNN forward in one pallas_call.

    p: dict of layer-stacked parameters (leading axis = num_layers);
       weight matrices bf16, biases / layernorm params f32.
    """
    B, S, E = x.shape
    L = p["wqkv"].shape[0]
    H = p["w1"].shape[2]
    if b_block is None:
        b_block = B          # single-TC chips: fold the whole batch into matmul rows
    assert B % b_block == 0
    nb = B // b_block

    wspec = lambda *shape: pl.BlockSpec((1,) + shape, lambda b, l: (l, 0, 0))
    in_specs = [
        pl.BlockSpec((b_block, S, E), lambda b, l: (b, 0, 0)),   # x
        wspec(E, 3 * E), wspec(1, 3 * E),                        # wqkv, bqkv
        wspec(E, E), wspec(1, E),                                # wo, bo
        wspec(1, E), wspec(1, E),                                # ln1 gamma, beta
        wspec(E, H), wspec(1, H),                                # w1, b1
        wspec(H, E), wspec(1, E),                                # w2, b2
        wspec(1, E), wspec(1, E),                                # ln2 gamma, beta
    ]
    pooled = pl.pallas_call(
        functools.partial(fused_threats_kernel, num_heads=num_heads),
        out_shape=jax.ShapeDtypeStruct((B, S), x.dtype),
        grid=(nb, L),
        in_specs=in_specs,
        out_specs=pl.BlockSpec((b_block, S), lambda b, l: (b, 0)),
        scratch_shapes=[pltpu.VMEM((b_block, S, E), jnp.float32)],
        compiler_params=pltpu.CompilerParams(
            dimension_semantics=("parallel", "arbitrary")),
    )(x, p["wqkv"], p["bqkv"], p["wo"], p["bo"], p["g1"], p["bt1"],
      p["w1"], p["bb1"], p["w2"], p["bb2"], p["g2"], p["bt2"])
    return pooled[..., None]   # (B, S, 1), matching AdaptiveAvgPool1d(1)


# ----------------------------- reference (pure JAX, f32) ----------------------
def _ref_block(x, p, num_heads):
    B, S, E = x.shape
    dh = E // num_heads
    qkv = x @ p["wqkv"] + p["bqkv"][0]
    q, k, v = qkv[..., :E], qkv[..., E:2 * E], qkv[..., 2 * E:]
    rs = lambda t: t.reshape(B, S, num_heads, dh).transpose(0, 2, 1, 3)
    q, k, v = rs(q) / (dh ** 0.5), rs(k), rs(v)
    s = jnp.einsum("bhqd,bhkd->bhqk", q, k)
    a = jnp.einsum("bhqk,bhkd->bhqd", jax.nn.softmax(s, axis=-1), v)
    a = a.transpose(0, 2, 1, 3).reshape(B, S, E) @ p["wo"] + p["bo"][0]

    def ln(y, g, b):
        mu = y.mean(-1, keepdims=True)
        var = ((y - mu) ** 2).mean(-1, keepdims=True)
        return (y - mu) / jnp.sqrt(var + EPS) * g[0] + b[0]

    x1 = ln(x + a, p["g1"], p["bt1"])
    h = jax.nn.relu(x1 @ p["w1"] + p["bb1"][0]) @ p["w2"] + p["bb2"][0]
    return ln(x1 + h, p["g2"], p["bt2"])


def _ref_forward(x, layers, num_heads):
    for p in layers:
        x = _ref_block(x, p, num_heads)
    return x.mean(axis=-1, keepdims=True)


# ----------------------------- parameter init ---------------------------------
def init_params(key, num_layers, E, H):
    """f32 per-layer params (PyTorch (out,in) layout transposed to (in,out))."""
    layers = []
    for l in range(num_layers):
        ks = jax.random.split(jax.random.fold_in(key, l), 12)
        sc = 0.05
        wqkv_pt = sc * jax.random.normal(ks[0], (3 * E, E), jnp.float32)
        wo_pt = sc * jax.random.normal(ks[1], (E, E), jnp.float32)
        w1_pt = sc * jax.random.normal(ks[2], (H, E), jnp.float32)
        w2_pt = sc * jax.random.normal(ks[3], (E, H), jnp.float32)
        layers.append(dict(
            wqkv=wqkv_pt.T, bqkv=sc * jax.random.normal(ks[4], (1, 3 * E)),
            wo=wo_pt.T, bo=sc * jax.random.normal(ks[5], (1, E)),
            w1=w1_pt.T, bb1=sc * jax.random.normal(ks[6], (1, H)),
            w2=w2_pt.T, bb2=sc * jax.random.normal(ks[7], (1, E)),
            g1=1.0 + 0.2 * jax.random.normal(ks[8], (1, E)),
            bt1=0.2 * jax.random.normal(ks[9], (1, E)),
            g2=1.0 + 0.2 * jax.random.normal(ks[10], (1, E)),
            bt2=0.2 * jax.random.normal(ks[11], (1, E)),
        ))
    return layers


def stack_params(layers, weight_dtype=jnp.bfloat16):
    """Stack per-layer params along a leading L axis; weights -> bf16."""
    stk = lambda name, dt: jnp.stack([p[name] for p in layers], 0).astype(dt)
    f32 = jnp.float32
    return dict(
        wqkv=stk("wqkv", weight_dtype), bqkv=stk("bqkv", f32),
        wo=stk("wo", weight_dtype), bo=stk("bo", f32),
        g1=stk("g1", f32), bt1=stk("bt1", f32),
        w1=stk("w1", weight_dtype), bb1=stk("bb1", f32),
        w2=stk("w2", weight_dtype), bb2=stk("bb2", f32),
        g2=stk("g2", f32), bt2=stk("bt2", f32),
    )


if __name__ == "__main__":
    B, S, E, NH, H, L = 2, 16, 128, 4, 256, 3   # small shapes consistent w/ module
    key = jax.random.PRNGKey(0)
    kx, kp = jax.random.split(key)
    x = jax.random.normal(kx, (B, S, E), jnp.float32)

    ref_layers = init_params(kp, L, E, H)       # f32 "PyTorch" parameters
    kparams = stack_params(ref_layers)          # stacked, weight matrices bf16

    out = jax.block_until_ready(threats_nn(x, kparams, NH))
    assert out.shape == (B, S, 1), out.shape

    ref = _ref_forward(x, ref_layers, NH)
    err = float(jnp.max(jnp.abs(out - ref)))
    # bf16 weights/matmul inputs with f32 accumulation vs pure-f32 reference.
    assert err < 1e-2, err
    print("KERNEL_OK")
</pallas_src>

<mosaic_0001>
module attributes {stable_mosaic.version = 11 : i64} {
  func.func @fused_threats_kernel(%arg0: i32, %arg1: i32, %arg2: memref<2x16x128xf32, #tpu.memory_space<vmem>>, %arg3: memref<1x128x384xbf16, #tpu.memory_space<vmem>>, %arg4: memref<1x1x384xf32, #tpu.memory_space<vmem>>, %arg5: memref<1x128x128xbf16, #tpu.memory_space<vmem>>, %arg6: memref<1x1x128xf32, #tpu.memory_space<vmem>>, %arg7: memref<1x1x128xf32, #tpu.memory_space<vmem>>, %arg8: memref<1x1x128xf32, #tpu.memory_space<vmem>>, %arg9: memref<1x128x256xbf16, #tpu.memory_space<vmem>>, %arg10: memref<1x1x256xf32, #tpu.memory_space<vmem>>, %arg11: memref<1x256x128xbf16, #tpu.memory_space<vmem>>, %arg12: memref<1x1x128xf32, #tpu.memory_space<vmem>>, %arg13: memref<1x1x128xf32, #tpu.memory_space<vmem>>, %arg14: memref<1x1x128xf32, #tpu.memory_space<vmem>>, %arg15: memref<2x16xf32, #tpu.memory_space<vmem>>, %arg16: memref<2x16x128xf32, #tpu.memory_space<vmem>>) attributes {dimension_semantics = [#tpu.dimension_semantics<parallel>, #tpu.dimension_semantics<arbitrary>], iteration_bounds = array<i64: 1, 3>, scalar_prefetch = 0 : i64, scratch_operands = 1 : i64, tpu.core_type = #tpu.core_type<tc>, window_params = [{transform_indices = @transform_0, window_bounds = array<i64: 2, 16, 128>}, {transform_indices = @transform_1, window_bounds = array<i64: 1, 128, 384>}, {transform_indices = @transform_2, window_bounds = array<i64: 1, 1, 384>}, {transform_indices = @transform_3, window_bounds = array<i64: 1, 128, 128>}, {transform_indices = @transform_4, window_bounds = array<i64: 1, 1, 128>}, {transform_indices = @transform_5, window_bounds = array<i64: 1, 1, 128>}, {transform_indices = @transform_6, window_bounds = array<i64: 1, 1, 128>}, {transform_indices = @transform_7, window_bounds = array<i64: 1, 128, 256>}, {transform_indices = @transform_8, window_bounds = array<i64: 1, 1, 256>}, {transform_indices = @transform_9, window_bounds = array<i64: 1, 256, 128>}, {transform_indices = @transform_10, window_bounds = array<i64: 1, 1, 128>}, {transform_indices = @transform_11, window_bounds = array<i64: 1, 1, 128>}, {transform_indices = @transform_12, window_bounds = array<i64: 1, 1, 128>}, {transform_indices = @transform_13, window_bounds = array<i64: 2, 16>}]} {
    %c0_i32 = arith.constant 0 : i32
    %0 = arith.cmpi eq, %arg1, %c0_i32 : i32
    %1 = arith.extui %0 : i1 to i32
    %c0_i32_0 = arith.constant 0 : i32
    %2 = arith.cmpi ne, %1, %c0_i32_0 : i32
    scf.if %2 {
      %c0_62 = arith.constant 0 : index
      %c0_63 = arith.constant 0 : index
      %c0_64 = arith.constant 0 : index
      %185 = vector.load %arg2[%c0_62, %c0_63, %c0_64] : memref<2x16x128xf32, #tpu.memory_space<vmem>>, vector<2x16x128xf32>
      %c0_65 = arith.constant 0 : index
      %c0_66 = arith.constant 0 : index
      %c0_67 = arith.constant 0 : index
      %186 = vector.load %arg16[%c0_65, %c0_66, %c0_67] : memref<2x16x128xf32, #tpu.memory_space<vmem>>, vector<2x16x128xf32>
      tpu.vector_store %arg16[%c0_65, %c0_66, %c0_67], %185 {strides = array<i32>} : memref<2x16x128xf32, #tpu.memory_space<vmem>>, vector<2x16x128xf32>,
    } else {
    }
    %c0 = arith.constant 0 : index
    %c0_1 = arith.constant 0 : index
    %c0_2 = arith.constant 0 : index
    %3 = vector.load %arg16[%c0, %c0_1, %c0_2] : memref<2x16x128xf32, #tpu.memory_space<vmem>>, vector<2x16x128xf32>
    %4 = vector.shape_cast %3 : vector<2x16x128xf32> to vector<32x128xf32>
    %5 = arith.truncf %4 : vector<32x128xf32> to vector<32x128xbf16>
    %c0_3 = arith.constant 0 : index
    %c0_4 = arith.constant 0 : index
    %c0_5 = arith.constant 0 : index
    %6 = vector.load %arg3[%c0_3, %c0_4, %c0_5] : memref<1x128x384xbf16, #tpu.memory_space<vmem>>, vector<1x128x384xbf16>
    %7 = vector.shape_cast %6 : vector<1x128x384xbf16> to vector<128x384xbf16>
    %cst = arith.constant dense<0.000000e+00> : vector<32x384xf32>
    %8 = tpu.matmul %5, %7, %cst {dimension_numbers = #tpu.dot_dimension_numbers<[1], [0], [0], [1], [0, 0, 1, 1], [], []>} : vector<32x128xbf16>, vector<128x384xbf16>, vector<32x384xf32> -> vector<32x384xf32>
    %c0_6 = arith.constant 0 : index
    %c0_7 = arith.constant 0 : index
    %c0_8 = arith.constant 0 : index
    %9 = vector.load %arg4[%c0_6, %c0_7, %c0_8] : memref<1x1x384xf32, #tpu.memory_space<vmem>>, vector<1x1x384xf32>
    %10 = vector.shape_cast %9 : vector<1x1x384xf32> to vector<1x384xf32>
    %11 = vector.broadcast %10 : vector<1x384xf32> to vector<32x384xf32>
    %12 = arith.addf %8, %11 : vector<32x384xf32>
    %13 = vector.extract_strided_slice %12 {offsets = [0, 0], sizes = [32, 128], strides = [1, 1]} : vector<32x384xf32> to vector<32x128xf32>
    %14 = vector.extract_strided_slice %12 {offsets = [0, 128], sizes = [32, 128], strides = [1, 1]} : vector<32x384xf32> to vector<32x128xf32>
    %15 = vector.extract_strided_slice %12 {offsets = [0, 256], sizes = [32, 128], strides = [1, 1]} : vector<32x384xf32> to vector<32x128xf32>
    %16 = vector.extract_strided_slice %13 {offsets = [0, 0], sizes = [16, 32], strides = [1, 1]} : vector<32x128xf32> to vector<16x32xf32>
    %17 = vector.extract_strided_slice %13 {offsets = [0, 32], sizes = [16, 32], strides = [1, 1]} : vector<32x128xf32> to vector<16x32xf32>
    %18 = vector.extract_strided_slice %13 {offsets = [0, 64], sizes = [16, 32], strides = [1, 1]} : vector<32x128xf32> to vector<16x32xf32>
    %19 = vector.extract_strided_slice %13 {offsets = [0, 96], sizes = [16, 32], strides = [1, 1]} : vector<32x128xf32> to vector<16x32xf32>
    %20 = vector.extract_strided_slice %13 {offsets = [16, 0], sizes = [16, 32], strides = [1, 1]} : vector<32x128xf32> to vector<16x32xf32>
    %21 = vector.extract_strided_slice %13 {offsets = [16, 32], sizes = [16, 32], strides = [1, 1]} : vector<32x128xf32> to vector<16x32xf32>
    %22 = vector.extract_strided_slice %13 {offsets = [16, 64], sizes = [16, 32], strides = [1, 1]} : vector<32x128xf32> to vector<16x32xf32>
    %23 = vector.extract_strided_slice %13 {offsets = [16, 96], sizes = [16, 32], strides = [1, 1]} : vector<32x128xf32> to vector<16x32xf32>
    %24 = vector.shape_cast %16 : vector<16x32xf32> to vector<1x16x32xf32>
    %25 = vector.shape_cast %17 : vector<16x32xf32> to vector<1x16x32xf32>
    %26 = vector.shape_cast %18 : vector<16x32xf32> to vector<1x16x32xf32>
    %27 = vector.shape_cast %19 : vector<16x32xf32> to vector<1x16x32xf32>
    %28 = vector.shape_cast %20 : vector<16x32xf32> to vector<1x16x32xf32>
    %29 = vector.shape_cast %21 : vector<16x32xf32> to vector<1x16x32xf32>
    %30 = vector.shape_cast %22 : vector<16x32xf32> to vector<1x16x32xf32>
    %31 = vector.shape_cast %23 : vector<16x32xf32> to vector<1x16x32xf32>
    %32 = tpu.concatenate %24, %25, %26, %27, %28, %29, %30, %31 in 0 : vector<1x16x32xf32>, vector<1x16x32xf32>, vector<1x16x32xf32>, vector<1x16x32xf32>, vector<1x16x32xf32>, vector<1x16x32xf32>, vector<1x16x32xf32>, vector<1x16x32xf32> -> vector<8x16x32xf32>
    %33 = arith.truncf %32 : vector<8x16x32xf32> to vector<8x16x32xbf16>
    %34 = vector.extract_strided_slice %14 {offsets = [0, 0], sizes = [16, 32], strides = [1, 1]} : vector<32x128xf32> to vector<16x32xf32>
    %35 = vector.extract_strided_slice %14 {offsets = [0, 32], sizes = [16, 32], strides = [1, 1]} : vector<32x128xf32> to vector<16x32xf32>
    %36 = vector.extract_strided_slice %14 {offsets = [0, 64], sizes = [16, 32], strides = [1, 1]} : vector<32x128xf32> to vector<16x32xf32>
    %37 = vector.extract_strided_slice %14 {offsets = [0, 96], sizes = [16, 32], strides = [1, 1]} : vector<32x128xf32> to vector<16x32xf32>
    %38 = vector.extract_strided_slice %14 {offsets = [16, 0], sizes = [16, 32], strides = [1, 1]} : vector<32x128xf32> to vector<16x32xf32>
    %39 = vector.extract_strided_slice %14 {offsets = [16, 32], sizes = [16, 32], strides = [1, 1]} : vector<32x128xf32> to vector<16x32xf32>
    %40 = vector.extract_strided_slice %14 {offsets = [16, 64], sizes = [16, 32], strides = [1, 1]} : vector<32x128xf32> to vector<16x32xf32>
    %41 = vector.extract_strided_slice %14 {offsets = [16, 96], sizes = [16, 32], strides = [1, 1]} : vector<32x128xf32> to vector<16x32xf32>
    %42 = vector.shape_cast %34 : vector<16x32xf32> to vector<1x16x32xf32>
    %43 = vector.shape_cast %35 : vector<16x32xf32> to vector<1x16x32xf32>
    %44 = vector.shape_cast %36 : vector<16x32xf32> to vector<1x16x32xf32>
    %45 = vector.shape_cast %37 : vector<16x32xf32> to vector<1x16x32xf32>
    %46 = vector.shape_cast %38 : vector<16x32xf32> to vector<1x16x32xf32>
    %47 = vector.shape_cast %39 : vector<16x32xf32> to vector<1x16x32xf32>
    %48 = vector.shape_cast %40 : vector<16x32xf32> to vector<1x16x32xf32>
    %49 = vector.shape_cast %41 : vector<16x32xf32> to vector<1x16x32xf32>
    %50 = tpu.concatenate %42, %43, %44, %45, %46, %47, %48, %49 in 0 : vector<1x16x32xf32>, vector<1x16x32xf32>, vector<1x16x32xf32>, vector<1x16x32xf32>, vector<1x16x32xf32>, vector<1x16x32xf32>, vector<1x16x32xf32>, vector<1x16x32xf32> -> vector<8x16x32xf32>
    %51 = arith.truncf %50 : vector<8x16x32xf32> to vector<8x16x32xbf16>
    %52 = vector.extract_strided_slice %15 {offsets = [0, 0], sizes = [16, 32], strides = [1, 1]} : vector<32x128xf32> to vector<16x32xf32>
    %53 = vector.extract_strided_slice %15 {offsets = [0, 32], sizes = [16, 32], strides = [1, 1]} : vector<32x128xf32> to vector<16x32xf32>
    %54 = vector.extract_strided_slice %15 {offsets = [0, 64], sizes = [16, 32], strides = [1, 1]} : vector<32x128xf32> to vector<16x32xf32>
    %55 = vector.extract_strided_slice %15 {offsets = [0, 96], sizes = [16, 32], strides = [1, 1]} : vector<32x128xf32> to vector<16x32xf32>
    %56 = vector.extract_strided_slice %15 {offsets = [16, 0], sizes = [16, 32], strides = [1, 1]} : vector<32x128xf32> to vector<16x32xf32>
    %57 = vector.extract_strided_slice %15 {offsets = [16, 32], sizes = [16, 32], strides = [1, 1]} : vector<32x128xf32> to vector<16x32xf32>
    %58 = vector.extract_strided_slice %15 {offsets = [16, 64], sizes = [16, 32], strides = [1, 1]} : vector<32x128xf32> to vector<16x32xf32>
    %59 = vector.extract_strided_slice %15 {offsets = [16, 96], sizes = [16, 32], strides = [1, 1]} : vector<32x128xf32> to vector<16x32xf32>
    %60 = vector.shape_cast %52 : vector<16x32xf32> to vector<1x16x32xf32>
    %61 = vector.shape_cast %53 : vector<16x32xf32> to vector<1x16x32xf32>
    %62 = vector.shape_cast %54 : vector<16x32xf32> to vector<1x16x32xf32>
    %63 = vector.shape_cast %55 : vector<16x32xf32> to vector<1x16x32xf32>
    %64 = vector.shape_cast %56 : vector<16x32xf32> to vector<1x16x32xf32>
    %65 = vector.shape_cast %57 : vector<16x32xf32> to vector<1x16x32xf32>
    %66 = vector.shape_cast %58 : vector<16x32xf32> to vector<1x16x32xf32>
    %67 = vector.shape_cast %59 : vector<16x32xf32> to vector<1x16x32xf32>
    %68 = tpu.concatenate %60, %61, %62, %63, %64, %65, %66, %67 in 0 : vector<1x16x32xf32>, vector<1x16x32xf32>, vector<1x16x32xf32>, vector<1x16x32xf32>, vector<1x16x32xf32>, vector<1x16x32xf32>, vector<1x16x32xf32>, vector<1x16x32xf32> -> vector<8x16x32xf32>
    %69 = arith.truncf %68 : vector<8x16x32xf32> to vector<8x16x32xbf16>
    "tpu.trace_start"() <{level = 10 : i32, message = "bqd,bkd->bqk"}> : () -> ()
    %cst_9 = arith.constant dense<0.000000e+00> : vector<8x16x16xf32>
    %70 = tpu.matmul %33, %51, %cst_9 {dimension_numbers = #tpu.dot_dimension_numbers<[2], [2], [1], [1], [0, 0, 0, 1, 1, 1], [0], [0]>} : vector<8x16x32xbf16>, vector<8x16x32xbf16>, vector<8x16x16xf32> -> vector<8x16x16xf32>
    "tpu.trace_stop"() : () -> ()
    %cst_10 = arith.constant 0.176776692 : f32
    %71 = vector.broadcast %cst_10 : f32 to vector<8x16x16xf32>
    %72 = arith.mulf %70, %71 : vector<8x16x16xf32>
    %cst_11 = arith.constant dense<0xFF800000> : vector<8x16xf32>
    %73 = vector.multi_reduction <maximumf>, %72, %cst_11 [2] : vector<8x16x16xf32> to vector<8x16xf32>
    %74 = vector.shape_cast %73 : vector<8x16xf32> to vector<8x16x1xf32>
    %75 = vector.broadcast %74 : vector<8x16x1xf32> to vector<8x16x16xf32>
    %76 = arith.subf %72, %75 : vector<8x16x16xf32>
    %77 = math.exp %76 : vector<8x16x16xf32>
    %cst_12 = arith.constant dense<0.000000e+00> : vector<8x16xf32>
    %78 = vector.multi_reduction <add>, %77, %cst_12 [2] : vector<8x16x16xf32> to vector<8x16xf32>
    %79 = vector.shape_cast %78 : vector<8x16xf32> to vector<8x16x1xf32>
    %80 = tpu.reciprocal %79 {approx = true} : vector<8x16x1xf32> -> vector<8x16x1xf32>
    %81 = vector.broadcast %80 : vector<8x16x1xf32> to vector<8x16x16xf32>
    %82 = arith.mulf %77, %81 : vector<8x16x16xf32>
    %83 = arith.truncf %82 : vector<8x16x16xf32> to vector<8x16x16xbf16>
    "tpu.trace_start"() <{level = 10 : i32, message = "bqk,bkd->bqd"}> : () -> ()
    %cst_13 = arith.constant dense<0.000000e+00> : vector<8x16x32xf32>
    %84 = tpu.matmul %83, %69, %cst_13 {dimension_numbers = #tpu.dot_dimension_numbers<[2], [1], [1], [2], [0, 0, 0, 1, 1, 2], [0], [0]>} : vector<8x16x16xbf16>, vector<8x16x32xbf16>, vector<8x16x32xf32> -> vector<8x16x32xf32>
    "tpu.trace_stop"() : () -> ()
    %85 = vector.extract_strided_slice %84 {offsets = [0, 0, 0], sizes = [1, 16, 32], strides = [1, 1, 1]} : vector<8x16x32xf32> to vector<1x16x32xf32>
    %86 = vector.shape_cast %85 : vector<1x16x32xf32> to vector<16x32xf32>
    %87 = vector.extract_strided_slice %84 {offsets = [1, 0, 0], sizes = [1, 16, 32], strides = [1, 1, 1]} : vector<8x16x32xf32> to vector<1x16x32xf32>
    %88 = vector.shape_cast %87 : vector<1x16x32xf32> to vector<16x32xf32>
    %89 = vector.extract_strided_slice %84 {offsets = [2, 0, 0], sizes = [1, 16, 32], strides = [1, 1, 1]} : vector<8x16x32xf32> to vector<1x16x32xf32>
    %90 = vector.shape_cast %89 : vector<1x16x32xf32> to vector<16x32xf32>
    %91 = vector.extract_strided_slice %84 {offsets = [3, 0, 0], sizes = [1, 16, 32], strides = [1, 1, 1]} : vector<8x16x32xf32> to vector<1x16x32xf32>
    %92 = vector.shape_cast %91 : vector<1x16x32xf32> to vector<16x32xf32>
    %93 = tpu.concatenate %86, %88, %90, %92 in 1 : vector<16x32xf32>, vector<16x32xf32>, vector<16x32xf32>, vector<16x32xf32> -> vector<16x128xf32>
    %94 = vector.extract_strided_slice %84 {offsets = [4, 0, 0], sizes = [1, 16, 32], strides = [1, 1, 1]} : vector<8x16x32xf32> to vector<1x16x32xf32>
    %95 = vector.shape_cast %94 : vector<1x16x32xf32> to vector<16x32xf32>
    %96 = vector.extract_strided_slice %84 {offsets = [5, 0, 0], sizes = [1, 16, 32], strides = [1, 1, 1]} : vector<8x16x32xf32> to vector<1x16x32xf32>
    %97 = vector.shape_cast %96 : vector<1x16x32xf32> to vector<16x32xf32>
    %98 = vector.extract_strided_slice %84 {offsets = [6, 0, 0], sizes = [1, 16, 32], strides = [1, 1, 1]} : vector<8x16x32xf32> to vector<1x16x32xf32>
    %99 = vector.shape_cast %98 : vector<1x16x32xf32> to vector<16x32xf32>
    %100 = vector.extract_strided_slice %84 {offsets = [7, 0, 0], sizes = [1, 16, 32], strides = [1, 1, 1]} : vector<8x16x32xf32> to vector<1x16x32xf32>
    %101 = vector.shape_cast %100 : vector<1x16x32xf32> to vector<16x32xf32>
    %102 = tpu.concatenate %95, %97, %99, %101 in 1 : vector<16x32xf32>, vector<16x32xf32>, vector<16x32xf32>, vector<16x32xf32> -> vector<16x128xf32>
    %103 = tpu.concatenate %93, %102 in 0 : vector<16x128xf32>, vector<16x128xf32> -> vector<32x128xf32>
    %104 = arith.truncf %103 : vector<32x128xf32> to vector<32x128xbf16>
    %c0_14 = arith.constant 0 : index
    %c0_15 = arith.constant 0 : index
    %c0_16 = arith.constant 0 : index
    %105 = vector.load %arg5[%c0_14, %c0_15, %c0_16] : memref<1x128x128xbf16, #tpu.memory_space<vmem>>, vector<1x128x128xbf16>
    %106 = vector.shape_cast %105 : vector<1x128x128xbf16> to vector<128x128xbf16>
    %cst_17 = arith.constant dense<0.000000e+00> : vector<32x128xf32>
    %107 = tpu.matmul %104, %106, %cst_17 {dimension_numbers = #tpu.dot_dimension_numbers<[1], [0], [0], [1], [0, 0, 1, 1], [], []>} : vector<32x128xbf16>, vector<128x128xbf16>, vector<32x128xf32> -> vector<32x128xf32>
    %c0_18 = arith.constant 0 : index
    %c0_19 = arith.constant 0 : index
    %c0_20 = arith.constant 0 : index
    %108 = vector.load %arg6[%c0_18, %c0_19, %c0_20] : memref<1x1x128xf32, #tpu.memory_space<vmem>>, vector<1x1x128xf32>
    %109 = vector.shape_cast %108 : vector<1x1x128xf32> to vector<1x128xf32>
    %110 = vector.broadcast %109 : vector<1x128xf32> to vector<32x128xf32>
    %111 = arith.addf %107, %110 : vector<32x128xf32>
    %112 = arith.addf %4, %111 : vector<32x128xf32>
    %c0_21 = arith.constant 0 : index
    %c0_22 = arith.constant 0 : index
    %c0_23 = arith.constant 0 : index
    %113 = vector.load %arg7[%c0_21, %c0_22, %c0_23] : memref<1x1x128xf32, #tpu.memory_space<vmem>>, vector<1x1x128xf32>
    %114 = vector.shape_cast %113 : vector<1x1x128xf32> to vector<1x128xf32>
    %c0_24 = arith.constant 0 : index
    %c0_25 = arith.constant 0 : index
    %c0_26 = arith.constant 0 : index
    %115 = vector.load %arg8[%c0_24, %c0_25, %c0_26] : memref<1x1x128xf32, #tpu.memory_space<vmem>>, vector<1x1x128xf32>
    %116 = vector.shape_cast %115 : vector<1x1x128xf32> to vector<1x128xf32>
    %cst_27 = arith.constant dense<0.000000e+00> : vector<32xf32>
    %117 = vector.multi_reduction <add>, %112, %cst_27 [1] : vector<32x128xf32> to vector<32xf32>
    %118 = vector.shape_cast %117 : vector<32xf32> to vector<32x1xf32>
    %cst_28 = arith.constant 1.280000e+02 : f32
    %119 = vector.broadcast %cst_28 : f32 to vector<32x1xf32>
    %120 = arith.divf %118, %119 : vector<32x1xf32>
    %121 = vector.broadcast %120 : vector<32x1xf32> to vector<32x128xf32>
    %122 = arith.subf %112, %121 : vector<32x128xf32>
    %123 = arith.mulf %122, %122 : vector<32x128xf32>
    %cst_29 = arith.constant dense<0.000000e+00> : vector<32xf32>
    %124 = vector.multi_reduction <add>, %123, %cst_29 [1] : vector<32x128xf32> to vector<32xf32>
    %125 = vector.shape_cast %124 : vector<32xf32> to vector<32x1xf32>
    %cst_30 = arith.constant 1.280000e+02 : f32
    %126 = vector.broadcast %cst_30 : f32 to vector<32x1xf32>
    %127 = arith.divf %125, %126 : vector<32x1xf32>
    %cst_31 = arith.constant 9.99999974E-6 : f32
    %128 = vector.broadcast %cst_31 : f32 to vector<32x1xf32>
    %129 = arith.addf %127, %128 : vector<32x1xf32>
    %130 = math.rsqrt %129 : vector<32x1xf32>
    %131 = vector.broadcast %130 : vector<32x1xf32> to vector<32x128xf32>
    %132 = arith.mulf %122, %131 : vector<32x128xf32>
    %133 = vector.broadcast %114 : vector<1x128xf32> to vector<32x128xf32>
    %134 = arith.mulf %132, %133 : vector<32x128xf32>
    %135 = vector.broadcast %116 : vector<1x128xf32> to vector<32x128xf32>
    %136 = arith.addf %134, %135 : vector<32x128xf32>
    %137 = arith.truncf %136 : vector<32x128xf32> to vector<32x128xbf16>
    %c0_32 = arith.constant 0 : index
    %c0_33 = arith.constant 0 : index
    %c0_34 = arith.constant 0 : index
    %138 = vector.load %arg9[%c0_32, %c0_33, %c0_34] : memref<1x128x256xbf16, #tpu.memory_space<vmem>>, vector<1x128x256xbf16>
    %139 = vector.shape_cast %138 : vector<1x128x256xbf16> to vector<128x256xbf16>
    %cst_35 = arith.constant dense<0.000000e+00> : vector<32x256xf32>
    %140 = tpu.matmul %137, %139, %cst_35 {dimension_numbers = #tpu.dot_dimension_numbers<[1], [0], [0], [1], [0, 0, 1, 1], [], []>} : vector<32x128xbf16>, vector<128x256xbf16>, vector<32x256xf32> -> vector<32x256xf32>
    %c0_36 = arith.constant 0 : index
    %c0_37 = arith.constant 0 : index
    %c0_38 = arith.constant 0 : index
    %141 = vector.load %arg10[%c0_36, %c0_37, %c0_38] : memref<1x1x256xf32, #tpu.memory_space<vmem>>, vector<1x1x256xf32>
    %142 = vector.shape_cast %141 : vector<1x1x256xf32> to vector<1x256xf32>
    %143 = vector.broadcast %142 : vector<1x256xf32> to vector<32x256xf32>
    %144 = arith.addf %140, %143 : vector<32x256xf32>
    %cst_39 = arith.constant 0.000000e+00 : f32
    %145 = vector.broadcast %cst_39 : f32 to vector<32x256xf32>
    %146 = arith.maximumf %144, %145 : vector<32x256xf32>
    %147 = arith.truncf %146 : vector<32x256xf32> to vector<32x256xbf16>
    %c0_40 = arith.constant 0 : index
    %c0_41 = arith.constant 0 : index
    %c0_42 = arith.constant 0 : index
    %148 = vector.load %arg11[%c0_40, %c0_41, %c0_42] : memref<1x256x128xbf16, #tpu.memory_space<vmem>>, vector<1x256x128xbf16>
    %149 = vector.shape_cast %148 : vector<1x256x128xbf16> to vector<256x128xbf16>
    %cst_43 = arith.constant dense<0.000000e+00> : vector<32x128xf32>
    %150 = tpu.matmul %147, %149, %cst_43 {dimension_numbers = #tpu.dot_dimension_numbers<[1], [0], [0], [1], [0, 0, 1, 1], [], []>} : vector<32x256xbf16>, vector<256x128xbf16>, vector<32x128xf32> -> vector<32x128xf32>
    %c0_44 = arith.constant 0 : index
    %c0_45 = arith.constant 0 : index
    %c0_46 = arith.constant 0 : index
    %151 = vector.load %arg12[%c0_44, %c0_45, %c0_46] : memref<1x1x128xf32, #tpu.memory_space<vmem>>, vector<1x1x128xf32>
    %152 = vector.shape_cast %151 : vector<1x1x128xf32> to vector<1x128xf32>
    %153 = vector.broadcast %152 : vector<1x128xf32> to vector<32x128xf32>
    %154 = arith.addf %150, %153 : vector<32x128xf32>
    %155 = arith.addf %136, %154 : vector<32x128xf32>
    %c0_47 = arith.constant 0 : index
    %c0_48 = arith.constant 0 : index
    %c0_49 = arith.constant 0 : index
    %156 = vector.load %arg13[%c0_47, %c0_48, %c0_49] : memref<1x1x128xf32, #tpu.memory_space<vmem>>, vector<1x1x128xf32>
    %157 = vector.shape_cast %156 : vector<1x1x128xf32> to vector<1x128xf32>
    %c0_50 = arith.constant 0 : index
    %c0_51 = arith.constant 0 : index
    %c0_52 = arith.constant 0 : index
    %158 = vector.load %arg14[%c0_50, %c0_51, %c0_52] : memref<1x1x128xf32, #tpu.memory_space<vmem>>, vector<1x1x128xf32>
    %159 = vector.shape_cast %158 : vector<1x1x128xf32> to vector<1x128xf32>
    %cst_53 = arith.constant dense<0.000000e+00> : vector<32xf32>
    %160 = vector.multi_reduction <add>, %155, %cst_53 [1] : vector<32x128xf32> to vector<32xf32>
    %161 = vector.shape_cast %160 : vector<32xf32> to vector<32x1xf32>
    %cst_54 = arith.constant 1.280000e+02 : f32
    %162 = vector.broadcast %cst_54 : f32 to vector<32x1xf32>
    %163 = arith.divf %161, %162 : vector<32x1xf32>
    %164 = vector.broadcast %163 : vector<32x1xf32> to vector<32x128xf32>
    %165 = arith.subf %155, %164 : vector<32x128xf32>
    %166 = arith.mulf %165, %165 : vector<32x128xf32>
    %cst_55 = arith.constant dense<0.000000e+00> : vector<32xf32>
    %167 = vector.multi_reduction <add>, %166, %cst_55 [1] : vector<32x128xf32> to vector<32xf32>
    %168 = vector.shape_cast %167 : vector<32xf32> to vector<32x1xf32>
    %cst_56 = arith.constant 1.280000e+02 : f32
    %169 = vector.broadcast %cst_56 : f32 to vector<32x1xf32>
    %170 = arith.divf %168, %169 : vector<32x1xf32>
    %cst_57 = arith.constant 9.99999974E-6 : f32
    %171 = vector.broadcast %cst_57 : f32 to vector<32x1xf32>
    %172 = arith.addf %170, %171 : vector<32x1xf32>
    %173 = math.rsqrt %172 : vector<32x1xf32>
    %174 = vector.broadcast %173 : vector<32x1xf32> to vector<32x128xf32>
    %175 = arith.mulf %165, %174 : vector<32x128xf32>
    %176 = vector.broadcast %157 : vector<1x128xf32> to vector<32x128xf32>
    %177 = arith.mulf %175, %176 : vector<32x128xf32>
    %178 = vector.broadcast %159 : vector<1x128xf32> to vector<32x128xf32>
    %179 = arith.addf %177, %178 : vector<32x128xf32>
    %180 = vector.shape_cast %179 : vector<32x128xf32> to vector<2x16x128xf32>
    %c0_58 = arith.constant 0 : index
    %c0_59 = arith.constant 0 : index
    %c0_60 = arith.constant 0 : index
    %181 = vector.load %arg16[%c0_58, %c0_59, %c0_60] : memref<2x16x128xf32, #tpu.memory_space<vmem>>, vector<2x16x128xf32>
    tpu.vector_store %arg16[%c0_58, %c0_59, %c0_60], %180 {strides = array<i32>} : memref<2x16x128xf32, #tpu.memory_space<vmem>>, vector<2x16x128xf32>,
    %c2_i32 = arith.constant 2 : i32
    %182 = arith.cmpi eq, %arg1, %c2_i32 : i32
    %183 = arith.extui %182 : i1 to i32
    %c0_i32_61 = arith.constant 0 : i32
    %184 = arith.cmpi ne, %183, %c0_i32_61 : i32
    scf.if %184 {
      %185 = vector.shape_cast %179 : vector<32x128xf32> to vector<2x16x128xf32>
      %cst_62 = arith.constant dense<0.000000e+00> : vector<2x16xf32>
      %186 = vector.multi_reduction <add>, %185, %cst_62 [2] : vector<2x16x128xf32> to vector<2x16xf32>
      %cst_63 = arith.constant 1.280000e+02 : f32
      %187 = vector.broadcast %cst_63 : f32 to vector<2x16xf32>
      %188 = arith.divf %186, %187 : vector<2x16xf32>
      %c0_64 = arith.constant 0 : index
      %c0_65 = arith.constant 0 : index
      %189 = vector.load %arg15[%c0_64, %c0_65] : memref<2x16xf32, #tpu.memory_space<vmem>>, vector<2x16xf32>
      tpu.vector_store %arg15[%c0_64, %c0_65], %188 {strides = array<i32>} : memref<2x16xf32, #tpu.memory_space<vmem>>, vector<2x16xf32>,
    } else {
    }
    return
  }
  func.func @transform_0(%arg0: i32, %arg1: i32) -> (i32, i32, i32) {
    %c0_i32 = arith.constant 0 : i32
    %c0_i32_0 = arith.constant 0 : i32
    %c0_i32_1 = arith.constant 0 : i32
    return %arg0, %c0_i32, %c0_i32_0 : i32, i32, i32
  }
  func.func @transform_1(%arg0: i32, %arg1: i32) -> (i32, i32, i32) {
    %c0_i32 = arith.constant 0 : i32
    %c0_i32_0 = arith.constant 0 : i32
    %c0_i32_1 = arith.constant 0 : i32
    return %arg1, %c0_i32, %c0_i32_0 : i32, i32, i32
  }
  func.func @transform_2(%arg0: i32, %arg1: i32) -> (i32, i32, i32) {
    %c0_i32 = arith.constant 0 : i32
    %c0_i32_0 = arith.constant 0 : i32
    %c0_i32_1 = arith.constant 0 : i32
    return %arg1, %c0_i32, %c0_i32_0 : i32, i32, i32
  }
  func.func @transform_3(%arg0: i32, %arg1: i32) -> (i32, i32, i32) {
    %c0_i32 = arith.constant 0 : i32
    %c0_i32_0 = arith.constant 0 : i32
    %c0_i32_1 = arith.constant 0 : i32
    return %arg1, %c0_i32, %c0_i32_0 : i32, i32, i32
  }
  func.func @transform_4(%arg0: i32, %arg1: i32) -> (i32, i32, i32) {
    %c0_i32 = arith.constant 0 : i32
    %c0_i32_0 = arith.constant 0 : i32
    %c0_i32_1 = arith.constant 0 : i32
    return %arg1, %c0_i32, %c0_i32_0 : i32, i32, i32
  }
  func.func @transform_5(%arg0: i32, %arg1: i32) -> (i32, i32, i32) {
    %c0_i32 = arith.constant 0 : i32
    %c0_i32_0 = arith.constant 0 : i32
    %c0_i32_1 = arith.constant 0 : i32
    return %arg1, %c0_i32, %c0_i32_0 : i32, i32, i32
  }
  func.func @transform_6(%arg0: i32, %arg1: i32) -> (i32, i32, i32) {
    %c0_i32 = arith.constant 0 : i32
    %c0_i32_0 = arith.constant 0 : i32
    %c0_i32_1 = arith.constant 0 : i32
    return %arg1, %c0_i32, %c0_i32_0 : i32, i32, i32
  }
  func.func @transform_7(%arg0: i32, %arg1: i32) -> (i32, i32, i32) {
    %c0_i32 = arith.constant 0 : i32
    %c0_i32_0 = arith.constant 0 : i32
    %c0_i32_1 = arith.constant 0 : i32
    return %arg1, %c0_i32, %c0_i32_0 : i32, i32, i32
  }
  func.func @transform_8(%arg0: i32, %arg1: i32) -> (i32, i32, i32) {
    %c0_i32 = arith.constant 0 : i32
    %c0_i32_0 = arith.constant 0 : i32
    %c0_i32_1 = arith.constant 0 : i32
    return %arg1, %c0_i32, %c0_i32_0 : i32, i32, i32
  }
  func.func @transform_9(%arg0: i32, %arg1: i32) -> (i32, i32, i32) {
    %c0_i32 = arith.constant 0 : i32
    %c0_i32_0 = arith.constant 0 : i32
    %c0_i32_1 = arith.constant 0 : i32
    return %arg1, %c0_i32, %c0_i32_0 : i32, i32, i32
  }
  func.func @transform_10(%arg0: i32, %arg1: i32) -> (i32, i32, i32) {
    %c0_i32 = arith.constant 0 : i32
    %c0_i32_0 = arith.constant 0 : i32
    %c0_i32_1 = arith.constant 0 : i32
    return %arg1, %c0_i32, %c0_i32_0 : i32, i32, i32
  }
  func.func @transform_11(%arg0: i32, %arg1: i32) -> (i32, i32, i32) {
    %c0_i32 = arith.constant 0 : i32
    %c0_i32_0 = arith.constant 0 : i32
    %c0_i32_1 = arith.constant 0 : i32
    return %arg1, %c0_i32, %c0_i32_0 : i32, i32, i32
  }
  func.func @transform_12(%arg0: i32, %arg1: i32) -> (i32, i32, i32) {
    %c0_i32 = arith.constant 0 : i32
    %c0_i32_0 = arith.constant 0 : i32
    %c0_i32_1 = arith.constant 0 : i32
    return %arg1, %c0_i32, %c0_i32_0 : i32, i32, i32
  }
  func.func @transform_13(%arg0: i32, %arg1: i32) -> (i32, i32) {
    %c0_i32 = arith.constant 0 : i32
    %c0_i32_0 = arith.constant 0 : i32
    return %arg0, %c0_i32 : i32, i32
  }
}

</mosaic_0001>

<bundles_post_ra>
// kernel: tpu_custom_call.1
= control target key start
LH: loop header
LB: loop body
LE: loop exit
PB: predicated region body
PF: predicated region fallthrough
CT: control target
= control target key end

     0   :  { %s4909_s0 = inlined_call_operand.hbm [shape: f32[2,16,128], index: 0, kind: input, shape index: {}]   ;;  %s4910_s1 = inlined_call_operand.hbm [shape: bf16[3,128,384], index: 1, kind: input, shape index: {}]   ;;  %s4911_s2 = inlined_call_operand.hbm [shape: f32[3,1,384], index: 2, kind: input, shape index: {}]   ;;  %s4912_s3 = inlined_call_operand.hbm [shape: bf16[3,128,128], index: 3, kind: input, shape index: {}]   ;;  %s4913_s4 = inlined_call_operand.hbm [shape: f32[3,1,128], index: 4, kind: input, shape index: {}]   ;;  %s4914_s5 = inlined_call_operand.hbm [shape: f32[3,1,128], index: 5, kind: input, shape index: {}]   ;;  %s4915_s6 = inlined_call_operand.hbm [shape: f32[3,1,128], index: 6, kind: input, shape index: {}]   ;;  %s4916_s7 = inlined_call_operand.hbm [shape: bf16[3,128,256], index: 7, kind: input, shape index: {}]   ;;  %s4917_s8 = inlined_call_operand.vmem [shape: f32[3,1,256], index: 8, kind: input, shape index: {}]   ;;  %s4918_s9 = inlined_call_operand.hbm [shape: bf16[3,256,128], index: 9, kind: input, shape index: {}]   ;;  %s4919_s10 = inlined_call_operand.vmem [shape: f32[3,1,128], index: 10, kind: input, shape index: {}]   ;;  %s4920_s11 = inlined_call_operand.hbm [shape: f32[3,1,128], index: 11, kind: input, shape index: {}]   ;;  %s4921_s12 = inlined_call_operand.hbm [shape: f32[3,1,128], index: 12, kind: input, shape index: {}]   ;;  %s4922_s13 = inlined_call_operand.hbm [shape: f32[2,16], index: 13, kind: output, shape index: {}]  }
   0x1   :  { %4933 = sst [smem:[#allocation33_spill]] %s4909_s0 }
   0x2   :  { %4934 = sst [smem:[#allocation34_spill]] %s4910_s1 }
   0x3   :  { %4935 = sst [smem:[#allocation35_spill]] %s4911_s2 }
   0x4   :  { %4936 = sst [smem:[#allocation36_spill]] %s4912_s3 }
   0x5   :  { %4937 = sst [smem:[#allocation37_spill]] %s4915_s6 }
   0x6   :  { %4938 = sst [smem:[#allocation38_spill]] %s4917_s8 }
   0x7   :  { %4939 = sst [smem:[#allocation39_spill]] %s4919_s10 }
   0x8   :  { %4940 = sst [smem:[#allocation40_spill]] %s4921_s12 }
   0x9   :  { %4941 = sst [smem:[#allocation41_spill]] %s4922_s13 }
   0xa   :  { %18 = vsyncpa [#allocation4], 0 }
   0xb   :  { %19 = vsyncpa [#allocation7], 0 }
   0xc   :  { %21 = vsyncpa [#allocation7 + $0x1], 0 }
   0xd   :  { %22 = vsyncpa [#allocation10], 0 }
   0xe   :  { %24 = vsyncpa [#allocation10 + $0x1], 0 }
   0xf   :  { %25 = vsyncpa [#allocation13], 0 }
  0x10   :  { %27 = vsyncpa [#allocation13 + $0x1], 0 }
  0x11   :  { %28 = vsyncpa [#allocation16], 0 }
  0x12   :  { %30 = vsyncpa [#allocation16 + $0x1], 0 }
  0x13   :  { %31 = vsyncpa [#allocation19], 0 }
  0x14   :  { %33 = vsyncpa [#allocation19 + $0x1], 0 }
  0x15   :  { %34 = vsyncpa [#allocation5], 0  ;;  %s4162_s25 = smov 0   ;;  %s4164_s26 = smov 0  }
  0x16   :  { %s4166_s27 = smov 0   ;;  %s4168_s28 = smov 0  }
  0x17   :  { %s4170_s29 = smov 0   ;;  %s4172_s30 = smov 0  }
  0x18 LB: > { %4942 = sst [smem:[#allocation29_spill]] %s4066_s27  ;;  %s49_s14 = sadd.s32 1, %s4074_s29  ;;  %s4078_s30 = sphi %s4172_s30, %s40_s30   ;;  %s4074_s29 = sphi %s4170_s29, %s4975_s29   ;;  %s4070_s28 = sphi %s4168_s28, %s4974_s28   ;;  %s4066_s27 = sphi %s4166_s27, %s4970_s27   ;;  %s4062_s26 = sphi %s4164_s26, %s4973_s26   ;;  %s4058_s25 = sphi %s4162_s25, %s4972_s25  }
  0x19   : > { %4943 = sst [smem:[#allocation30_spill]] %s4070_s28  ;;  %s85_s15 = sadd.s32 1, %s4066_s27 }
  0x1a   : > { %p50_p0 = scmp.ge.s32.totalorder %s49_s14, 3  ;;  %p92_p1 = scmp.ne.s32.totalorder %s4066_s27, %s4062_s26 }
  0x1b   : > { %p93_p2 = scmp.eq.s32.totalorder %s4078_s30, 0  ;;  %p3370_p4 = scmp.lt.s32.totalorder %s4078_s30, 3 }
  0x1c   : > { %s4977_s14 = smov (%p50_p0, %s49_s14), 0  ;;  %s4203_s17 = sand.u32 1, %s4078_s30  }
  0x1d   : > { %4944 = sst [smem:[#allocation31_spill]] %s4977_s14  ;;  %p94_p3 = por %p93_p2, %p92_p1 }
  0x1e   : > { %s82_s16 = ssub.s32 %s4074_s29, %s4977_s14  ;;  %s4206_s18 = sand.u32 1, %s4066_s27  }
  0x1f   : > { %p83_p5 = scmp.eq.s32.totalorder %s82_s16, 0  ;;  %s3301_s19 = smul.u32 192, %s4074_s29 }
  0x20   : > { %s3300_s21 = smul.u32 192, %s4206_s18  ;;  %s4946_s1 = sld [smem:[#allocation34_spill]] }
  0x21   : > { %s4210_s20 = scalar_select %p83_p5, %s4066_s27, %s85_s15  }
  0x22   : > { %p4216_p6 = pnand %p3370_p4, %p94_p3  ;;  %s456_s16 = scalar_lea.vmem [#allocation6], %s3300_s21 }
  0x23   : > { %4945 = sst [smem:[#allocation32_spill]] %s4210_s20  ;;  %s464_s8 = sshll.u32 %s456_s16, 4  ;;  %s465_s8 = int_to_ptr.vmem [resolvable:$true] %s464_s8 }
  0x24   : > { %s4930_s15 = scalar_lea.sflag [#allocation7], %s4203_s17  ;;  %s4080_s20 = smov 192  }
  0x25   : > { %s4081_s27 = smov 12   ;;  %s3233_s22 = sshll.u32 %s4074_s29, 6 }
  0x26   : > { %s461_s24 = scalar_lea.hbm %s4946_s1, %s3301_s19  ;;  %s2940_s19 = sshll.u32 %s4206_s18, 6 }
  0x27   : > { %s462_s13 = sshll.u32 %s461_s24, 4  ;;  %s4948_s3 = sld [smem:[#allocation36_spill]]  ;;  %s463_s13 = int_to_ptr.hbm [resolvable:$true] %s462_s13 }
  0x28   : > { %3341 = dma.hbm_to_vmem [thread:$0]  (!%p4216_p6), %s463_s13, 3072, %s465_s8, %s4930_s15, %s4080_s20, %s4080_s20, %s4081_s27  }
  0x29   : > { %s497_s16 = scalar_lea.vmem [#allocation9], %s2940_s19  ;;  %s4929_s28 = scalar_lea.sflag [#allocation10], %s4203_s17 }
  0x2a   : > { %s505_s10 = sshll.u32 %s497_s16, 4  ;;  %s4926_s12 = smov 64   ;;  %s506_s10 = int_to_ptr.vmem [resolvable:$true] %s505_s10 }
  0x2b   : > { %s4927_s6 = smov 4   ;;  %s535_s27 = scalar_lea.vmem [#allocation12], %s4206_s18 }
  0x2c   : > { %s542_s20 = sshll.u32 %s535_s27, 4  ;;  %s2943_s23 = sshll.u32 %s4206_s18, 7  ;;  %s543_s20 = int_to_ptr.vmem [resolvable:$true] %s542_s20 }
  0x2d   : > { %s502_s1 = scalar_lea.hbm %s4948_s3, %s3233_s22  ;;  %s4928_s22 = scalar_lea.sflag [#allocation13], %s4203_s17 }
  0x2e   : > { %s503_s21 = sshll.u32 %s502_s1, 4  ;;  %s538_s1 = scalar_lea.hbm %s4914_s5, %s4074_s29  ;;  %s504_s21 = int_to_ptr.hbm [resolvable:$true] %s503_s21 }
  0x2f   : > { %3347 = dma.hbm_to_vmem [thread:$0]  (!%p4216_p6), %s504_s21, 1024, %s506_s10, %s4929_s28, %s4926_s12, %s4926_s12, %s4927_s6  }
  0x30   : > { %s540_s19 = sshll.u32 %s538_s1, 4  ;;  %s3234_s24 = sshll.u32 %s4074_s29, 7  ;;  %s541_s19 = int_to_ptr.hbm [resolvable:$true] %s540_s19 }
  0x31   : > { %3353 = dma.hbm_to_vmem [thread:$0]  (!%p4216_p6), %s541_s19, 16, %s543_s20, %s4928_s22  }
  0x32   : > { %s575_s21 = scalar_lea.hbm %s4916_s7, %s3234_s24  ;;  %s570_s13 = scalar_lea.vmem [#allocation15], %s2943_s23 }
  0x33   : > { %s576_s8 = sshll.u32 %s575_s21, 4  ;;  %s578_s27 = sshll.u32 %s570_s13, 4  ;;  %s577_s8 = int_to_ptr.hbm [resolvable:$true] %s576_s8  ;;  %s579_s27 = int_to_ptr.vmem [resolvable:$true] %s578_s27 }
  0x34   : > { %s4931_s1 = scalar_lea.sflag [#allocation16], %s4203_s17  ;;  %s4084_s12 = smov 128  }
  0x35   : > { %s4085_s6 = smov 8   ;;  %s604_s16 = scalar_lea.hbm %s4918_s9, %s3234_s24 }
  0x36   : > { %3359 = dma.hbm_to_vmem [thread:$0]  (!%p4216_p6), %s577_s8, 2048, %s579_s27, %s4931_s1, %s4084_s12, %s4084_s12, %s4085_s6  }
  0x37   : > { %s605_s10 = sshll.u32 %s604_s16, 4  ;;  %s599_s21 = scalar_lea.vmem [#allocation17], %s2943_s23  ;;  %s4264_s10 = int_to_ptr.hbm [resolvable:$true] %s605_s10 }
  0x38   : > { %s607_s13 = sshll.u32 %s599_s21, 4  ;;  %s629_s15 = scalar_lea.hbm %s4920_s11, %s4074_s29  ;;  %s4266_s13 = int_to_ptr.vmem [resolvable:$true] %s607_s13 }
  0x39   : > { %s626_s8 = scalar_lea.vmem [#allocation18], %s4206_s18  ;;  %s631_s1 = sshll.u32 %s629_s15, 4  ;;  %s632_s1 = int_to_ptr.hbm [resolvable:$true] %s631_s1 }
  0x3a   : > { %s633_s27 = sshll.u32 %s626_s8, 4  ;;  %s4932_s24 = scalar_lea.sflag [#allocation19], %s4203_s17  ;;  %s634_s27 = int_to_ptr.vmem [resolvable:$true] %s633_s27 }
  0x3b   : > { %3365 = dma.hbm_to_vmem [thread:$0]  (!%p4216_p6), %s632_s1, 16, %s634_s27, %s4932_s24  }
  0x3c   : > { %s4279_s23 = sadd.s32 4294967295, %s4078_s30   ;;  %p98_p7 = scmp.ne.s32.totalorder %s4062_s26, %s4058_s25 }
  0x3d   : > { %p99_p8 = scmp.eq.s32.totalorder %s4279_s23, 0  ;;  %p2936_p9 = scmp.ge.s32.totalorder %s4078_s30, 1 }
  0x3e   : > { %p421_p10 = scmp.lt.s32.totalorder %s4078_s30, 4  ;;  %s4951_s0 = sld [smem:[#allocation33_spill]] }
  0x3f   : > { %p4288_p11 = por %p99_p8, %p98_p7  ;;  %s4086_s25 = smov [#allocation3]  }
  0x40   : > { %p4292_p12 = pnand %p2936_p9, %p421_p10  ;;  %s438_s19 = sshll.u32 %s4086_s25, 4  ;;  %s439_s19 = int_to_ptr.vmem [resolvable:$true] %s438_s19 }
  0x41   : > { %s3302_s16 = smul.u32 3, %s4206_s18  ;;  %s4952_s2 = sld [smem:[#allocation35_spill]] }
  0x42   : > { %p3334_p13 = pneg %p4292_p12  ;;  %s3303_s21 = smul.u32 3, %s4074_s29 }
  0x43   : > { %s478_s24 = scalar_lea.vmem [#allocation8], %s3302_s16  ;;  %s521_s27 = scalar_lea.hbm %s4913_s4, %s4074_s29 }
  0x44   : > { %s436_s20 = sshll.u32 %s4951_s0, 4  ;;  %p3335_p0 = pnand %p3334_p13, %p99_p8  ;;  %s437_s20 = int_to_ptr.hbm [resolvable:$true] %s436_s20 }
  0x45   : > { %s486_s25 = sshll.u32 %s478_s24, 4  ;;  %s4953_s0 = scalar_lea.sflag [#allocation7], %s4203_s17  ;;  %s487_s25 = int_to_ptr.vmem [resolvable:$true] %s486_s25 }
  0x46   : > { %3337 = dma.hbm_to_vmem [thread:$0]  (!%p3335_p0), %s437_s20, 512, %s439_s19, [#allocation4], %s4084_s12, %s4084_s12, %s4085_s6  }
  0x47   : > { %s482_s22 = scalar_lea.hbm %s4952_s2, %s3303_s21  ;;  %s518_s6 = scalar_lea.vmem [#allocation11], %s4206_s18 }
  0x48   : > { %s484_s1 = sshll.u32 %s482_s22, 4  ;;  %s525_s12 = sshll.u32 %s518_s6, 4  ;;  %s485_s1 = int_to_ptr.hbm [resolvable:$true] %s484_s1  ;;  %s526_s12 = int_to_ptr.vmem [resolvable:$true] %s525_s12 }
  0x49   : > { %3344 = dma.hbm_to_vmem [thread:$0]  (!%p4216_p6), %s485_s1, 48, %s487_s25, %s4953_s0  }
  0x4a   : > { %s523_s24 = sshll.u32 %s521_s27, 4  ;;  %s4954_s20 = scalar_lea.sflag [#allocation10], %s4203_s17  ;;  %s524_s24 = int_to_ptr.hbm [resolvable:$true] %s523_s24 }
  0x4b   : > { %3350 = dma.hbm_to_vmem [thread:$0]  (!%p4216_p6), %s524_s24, 16, %s526_s12, %s4954_s20  }
  0x4c   : > { %s4955_s22 = sld [smem:[#allocation37_spill]]  ;;  %s552_s1 = scalar_lea.vmem [#allocation14], %s4206_s18 }
  0x4d   : > { %s559_s25 = sshll.u32 %s552_s1, 4  ;;  %s4956_s8 = scalar_lea.sflag [#allocation13], %s4203_s17  ;;  %s560_s25 = int_to_ptr.vmem [resolvable:$true] %s559_s25 }
  0x4e   : > { %s4957_s27 = smov 4   ;;  %s4958_s6 = smov 64  }
  0x4f   : > { %s4959_s2 = scalar_lea.sflag [#allocation16], %s4203_s17  ;;  %s4960_s24 = sld [smem:[#allocation40_spill]] }
  0x50   : > { %3362 = dma.hbm_to_vmem [thread:$0]  (!%p4216_p6), %s4264_s10, 2048, %s4266_s13, %s4959_s2, %s4958_s6, %s4958_s6, %s4957_s27  }
  0x51   : > { %s643_s19 = scalar_lea.vmem [#allocation20], %s4206_s18 }
  0x52   : > { %s555_s0 = scalar_lea.hbm %s4955_s22, %s4074_s29  ;;  %s650_s16 = sshll.u32 %s643_s19, 4  ;;  %s651_s16 = int_to_ptr.vmem [resolvable:$true] %s650_s16 }
  0x53   : > { %s557_s21 = sshll.u32 %s555_s0, 4  ;;  %s4961_s0 = scalar_lea.sflag [#allocation19], %s4203_s17  ;;  %s558_s21 = int_to_ptr.hbm [resolvable:$true] %s557_s21 }
  0x54   : > { %3356 = dma.hbm_to_vmem [thread:$0]  (!%p4216_p6), %s558_s21, 16, %s560_s25, %s4956_s8  }
  0x55   : > { %s646_s20 = scalar_lea.hbm %s4960_s24, %s4074_s29  ;;  %659 = sbr.rel (%p4292_p12) target bundleno = 2281 (0x8e9), region = 72 }
  0x56   : > { %s648_s22 = sshll.u32 %s646_s20, 4  ;;  %s649_s22 = int_to_ptr.hbm [resolvable:$true] %s648_s22 }
  0x57   : > { %3368 = dma.hbm_to_vmem [thread:$0]  (!%p4216_p6), %s649_s22, 16, %s651_s16, %s4961_s0  }
  0x5a   : > { %4029 = dma.done.wait (%p99_p8), [#allocation4], 512  }
  0x5b   : > { %4031 = vsyncadd (%p99_p8), [#allocation4], 4294966784  ;;  %s4358_s2 = sand.u32 1, %s4279_s23   ;;  %s4361_s3 = sand.u32 1, %s4062_s26  }
  0x5c   : > { %s3304_s14 = smul.u32 192, %s4361_s3  ;;  %s667_s17 = scalar_lea.sflag [#allocation7], %s4358_s2 }
  0x5e   : > { %s4365_s18 = scalar_lea.vmem [#allocation6], %s3304_s14 }
  0x5f   : > { %4033 = dma.done.wait (%p4288_p11), %s667_s17, 3120  }
  0x60   : > { %4035 = vsyncadd (%p4288_p11), %s667_s17, 4294964176  ;;  %s3305_s10 = smul.u32 3, %s4361_s3  ;;  %s2951_s13 = sshll.u32 %s4361_s3, 6 }
  0x61   : > { %s687_s1 = scalar_lea.sflag [#allocation10], %s4358_s2  ;;  %s4376_s25 = scalar_lea.vmem [#allocation9], %s2951_s13 }
  0x62   : > { %s4373_s15 = scalar_lea.vmem [#allocation8], %s3305_s10 }
  0x63   : > { %4037 = dma.done.wait (%p4288_p11), %s687_s1, 1040  }
  0x64   : > { %4039 = vsyncadd (%p4288_p11), %s687_s1, 4294966256  ;;  %s699_s21 = scalar_lea.vmem [#allocation11], %s4361_s3  ;;  %s706_s8 = scalar_lea.sflag [#allocation13], %s4358_s2 }
  0x65   : > { %s708_s27 = scalar_lea.vmem [#allocation12], %s4361_s3 }
  0x66   : > { %4041 = dma.done.wait (%p4288_p11), %s706_s8, 32  }
  0x67   : > { %4043 = vsyncadd (%p4288_p11), %s706_s8, 4294967264  ;;  %s2952_s6 = sshll.u32 %s4361_s3, 7  ;;  %s717_s12 = scalar_lea.vmem [#allocation14], %s4361_s3 }
  0x68   : > { %s724_s24 = scalar_lea.sflag [#allocation16], %s4358_s2  ;;  %s4392_s20 = scalar_lea.vmem [#allocation15], %s2952_s6 }
  0x69   : > { %4045 = dma.done.wait (%p4288_p11), %s724_s24, 4096  }
  0x6a   : > { %4047 = vsyncadd (%p4288_p11), %s724_s24, 4294963200  ;;  %s4398_s19 = scalar_lea.vmem [#allocation17], %s2952_s6  ;;  %s744_s16 = scalar_lea.sflag [#allocation19], %s4358_s2 }
  0x6b   : > { %4049 = dma.done.wait (%p4288_p11), %s744_s16, 32  }
  0x6c   : > { %4051 = vsyncadd (%p4288_p11), %s744_s16, 4294967264  ;;  %s4962_s0 = sld [smem:[#allocation30_spill]]  ;;  %s755_s28 = scalar_lea.vmem [#allocation20], %s4361_s3 }
  0x6d   : > { %s4963_s1 = sld [smem:[#allocation39_spill]] }
  0x6e   : > { %s4964_s24 = sld [smem:[#allocation38_spill]] }
  0x72   : > { %p842_p1 = scmp.lt.s32.totalorder %s4962_s0, 2  ;;  %p2955_p2 = scmp.ne.s32.totalorder %s4962_s0, 0 }
  0x74   : > { %s4408_s14 = scalar_select %p842_p1, %s4962_s0, 2 }
  0x75   : > { %853 = sbr.rel (%p2955_p2) target bundleno = 127 (0x7f), region = 120 }
  0x76   : > { %s2954_s17 = sshll.u32 %s4408_s14, 1  ;;  %s848_s8 = scalar_lea.vmem %s4963_s1, %s4408_s14 }
  0x77   : > { %s4418_s22 = scalar_lea.vmem %s4964_s24, %s2954_s17 }
  0x7a   : > { %v854_v0 = vld [vmem:[#allocation3] sm:$0xff]  ;;  %v855_v1 = vld [vmem:[#allocation3 + $0x8] sm:$0xff]  ;;  %v856_v2 = vld [vmem:[#allocation3 + $0x10] sm:$0xff] }
  0x7b   : > { %858 = vst [vmem:[#allocation2 + $0x10] sm:$0xff] %v854_v0  ;;  %v857_v3 = vld [vmem:[#allocation3 + $0x18] sm:$0xff] }
  0x7c   : > { %859 = vst [vmem:[#allocation2] sm:$0xff] %v855_v1 }
  0x7d   : > { %860 = vst [vmem:[#allocation2 + $0x18] sm:$0xff] %v856_v2 }
  0x7e   : > { %861 = vst [vmem:[#allocation2 + $0x8] sm:$0xff] %v857_v3 }
  0x7f PF: > { %v3042_v4 = vld [vmem:[%s4365_s18 + $0xa8] sm:$0xf]  ;;  %v3258_v5 = vld [vmem:[%s4365_s18 + $0xb0] sm:$0xf0]  ;;  %v3257_v6 = vld [vmem:[%s4365_s18 + $0xac] sm:$0xf] }
  0x80   : > { %v3043_v7 = vor.u32 %v3258_v5, %v3042_v4  ;;  %v3044_v8 = vld [vmem:[%s4365_s18 + $0xb4] sm:$0xf0]  ;;  %v3030_v9 = vld [vmem:[%s4365_s18 + $0x90] sm:$0xf]  ;;  %v3255_v10 = vld [vmem:[%s4365_s18 + $0x98] sm:$0xf0] }
  0x81   : > { %v3047_v11 = vor.u32 %v3257_v6, %v3044_v8  ;;  %v3254_v12 = vld [vmem:[%s4365_s18 + $0x94] sm:$0xf]  ;;  %v3032_v13 = vld [vmem:[%s4365_s18 + $0x9c] sm:$0xf0]  ;;  %v3031_v14 = vor.u32 %v3255_v10, %v3030_v9  ;;  %v3018_v16 = vld [vmem:[%s4365_s18 + $0x78] sm:$0xf] }
  0x82   : > { %1036 = vmatpush.bf16.msra.mxu0 %v3043_v7  ;;  %v3035_v15 = vor.u32 %v3254_v12, %v3032_v13  ;;  %v3252_v17 = vld [vmem:[%s4365_s18 + $0x80] sm:$0xf0]  ;;  %v3251_v18 = vld [vmem:[%s4365_s18 + $0x7c] sm:$0xf]  ;;  %v3020_v19 = vld [vmem:[%s4365_s18 + $0x84] sm:$0xf0] }
  0x83   : > { %1055 = vmatpush.bf16.msra.mxu1 %v3047_v11  ;;  %v3019_v20 = vor.u32 %v3252_v17, %v3018_v16  ;;  %v3023_v21 = vor.u32 %v3251_v18, %v3020_v19  ;;  %v3006_v22 = vld [vmem:[%s4365_s18 + $0x60] sm:$0xf]  ;;  %v3249_v23 = vld [vmem:[%s4365_s18 + $0x68] sm:$0xf0]  ;;  %v3248_v24 = vld [vmem:[%s4365_s18 + $0x64] sm:$0xf] }
  0x84   : > { %v3008_v25 = vld [vmem:[%s4365_s18 + $0x6c] sm:$0xf0]  ;;  %v2994_v26 = vld [vmem:[%s4365_s18 + $0x48] sm:$0xf]  ;;  %v3007_v27 = vor.u32 %v3249_v23, %v3006_v22  ;;  %v3246_v28 = vld [vmem:[%s4365_s18 + $0x50] sm:$0xf0] }
  0x85   : > { %v3245_v29 = vld [vmem:[%s4365_s18 + $0x4c] sm:$0xf]  ;;  %v2996_v30 = vld [vmem:[%s4365_s18 + $0x54] sm:$0xf0]  ;;  %v3011_v31 = vor.u32 %v3248_v24, %v3008_v25  ;;  %v2995_v32 = vor.u32 %v3246_v28, %v2994_v26  ;;  %v2982_v34 = vld [vmem:[%s4365_s18 + $0x30] sm:$0xf] }
  0x86   : > { %1037 = vmatpush.bf16.msra.mxu0 %v3031_v14  ;;  %v2999_v33 = vor.u32 %v3245_v29, %v2996_v30  ;;  %v3243_v35 = vld [vmem:[%s4365_s18 + $0x38] sm:$0xf0]  ;;  %v3242_v36 = vld [vmem:[%s4365_s18 + $0x34] sm:$0xf]  ;;  %v2984_v37 = vld [vmem:[%s4365_s18 + $0x3c] sm:$0xf0] }
  0x87   : > { %1056 = vmatpush.bf16.msra.mxu1 %v3035_v15  ;;  %v2983_v38 = vor.u32 %v3243_v35, %v2982_v34  ;;  %v3050_v39 = vld [vmem:[%s4365_s18 + $0xb0] sm:$0xf]  ;;  %v3259_v40 = vld [vmem:[%s4365_s18 + $0xb8] sm:$0xf0]  ;;  %v3038_v41 = vld [vmem:[%s4365_s18 + $0x98] sm:$0xf]  ;;  %v2987_v42 = vor.u32 %v3242_v36, %v2984_v37 }
  0x88   : > { %v2970_v43 = vld [vmem:[%s4365_s18 + $0x18] sm:$0xf]  ;;  %v3240_v44 = vld [vmem:[%s4365_s18 + $0x20] sm:$0xf0]  ;;  %v3051_v45 = vor.u32 %v3259_v40, %v3050_v39  ;;  %v3239_v47 = vld [vmem:[%s4365_s18 + $0x1c] sm:$0xf] }
  0x89   : > { %v3256_v46 = vld [vmem:[%s4365_s18 + $0xa0] sm:$0xf0]  ;;  %v2972_v48 = vld [vmem:[%s4365_s18 + $0x24] sm:$0xf0]  ;;  %v2971_v50 = vor.u32 %v3240_v44, %v2970_v43  ;;  %v3026_v51 = vld [vmem:[%s4365_s18 + $0x80] sm:$0xf] }
  0x8a   : > { %1038 = vmatpush.bf16.msra.mxu0 %v3019_v20  ;;  %1074 = vmatpush.bf16.msra.mxu2 %v3051_v45  ;;  %v3039_v49 = vor.u32 %v3256_v46, %v3038_v41  ;;  %v3253_v52 = vld [vmem:[%s4365_s18 + $0x88] sm:$0xf0]  ;;  %v2975_v53 = vor.u32 %v3239_v47, %v2972_v48  ;;  %v2958_v54 = vld [vmem:[%s4365_s18] sm:$0xf]  ;;  %v3236_v56 = vld [vmem:[%s4365_s18 + $0x4] sm:$0xf] }
  0x8b   : > { %1057 = vmatpush.bf16.msra.mxu1 %v3023_v21  ;;  %v3237_v55 = vld [vmem:[%s4365_s18 + $0x8] sm:$0xf0]  ;;  %v2960_v57 = vld [vmem:[%s4365_s18 + $0xc] sm:$0xf0]  ;;  %v3027_v59 = vor.u32 %v3253_v52, %v3026_v51  ;;  %v863_v61 = vld [vmem:[#allocation2] sm:$0xff]  ;;  %s4089_s16 = smov 96  }
  0x8c   : > { %v862_v58 = vld [vmem:[#allocation2 + $0x10] sm:$0xff]  ;;  %v2959_v60 = vor.u32 %v3237_v55, %v2958_v54  ;;  %v3014_v62 = vld [vmem:[%s4365_s18 + $0x68] sm:$0xf]  ;;  %v2963_v0 = vor.u32 %v3236_v56, %v2960_v57  ;;  %v3247_v4 = vld [vmem:[%s4365_s18 + $0x58] sm:$0xf0]  ;;  %vm1271_vm0 = vcmask 261120  }
  0x8d   : > { %v3250_v63 = vld [vmem:[%s4365_s18 + $0x70] sm:$0xf0]  ;;  %v866_v1 = vpack.c.bf16 %v863_v61, %v862_v58  ;;  %v3002_v3 = vld [vmem:[%s4365_s18 + $0x50] sm:$0xf]  ;;  %v2990_v6 = vld [vmem:[%s4365_s18 + $0x38] sm:$0xf] }
  0x8e   : > { %1039 = vmatpush.bf16.msra.mxu0 %v3007_v27  ;;  %1075 = vmatpush.bf16.msra.mxu2 %v3039_v49  ;;  %v3015_v2 = vor.u32 %v3250_v63, %v3014_v62  ;;  %v3003_v5 = vor.u32 %v3247_v4, %v3002_v3  ;;  %v3244_v7 = vld [vmem:[%s4365_s18 + $0x40] sm:$0xf0]  ;;  %v2978_v9 = vld [vmem:[%s4365_s18 + $0x20] sm:$0xf]  ;;  %v3241_v10 = vld [vmem:[%s4365_s18 + $0x28] sm:$0xf0] }
  0x8f   : > { %1058 = vmatpush.bf16.msra.mxu1 %v3011_v31  ;;  %v2991_v8 = vor.u32 %v3244_v7, %v2990_v6  ;;  %v2979_v11 = vor.u32 %v3241_v10, %v2978_v9  ;;  %v2966_v12 = vld [vmem:[%s4365_s18 + $0x8] sm:$0xf]  ;;  %v3238_v13 = vld [vmem:[%s4365_s18 + $0x10] sm:$0xf0]  ;;  %v864_v14 = vld [vmem:[#allocation2 + $0x18] sm:$0xff]  ;;  %s4087_s18 = smov 32  }
  0x90   : > { %v865_v15 = vld [vmem:[#allocation2 + $0x8] sm:$0xff]  ;;  %v2967_v16 = vor.u32 %v3238_v13, %v2966_v12  ;;  %v4471_v18 = vld [vmem:[%s4373_s15] sm:$0x7]  ;;  %s4088_s15 = smov 64   ;;  %vm1518_vm1 = vcmask 130048   ;;  %vm1961_vm2 = vcmask 523264  }
  0x91   : > { %v867_v17 = vpack.c.bf16 %v865_v15, %v864_v14  ;;  %v903_v21 = vperm.slane %v4471_v18, 1  ;;  %v902_v23 = vperm.slane %v4471_v18, 0  ;;  %vm1964_vm3 = vcmask 785408  }
  0x92   : > { %1040 = vmatpush.bf16.msra.mxu0 %v2995_v32  ;;  %1076 = vmatpush.bf16.msra.mxu2 %v3027_v59 }
  0x93   : > { %1059 = vmatpush.bf16.msra.mxu1 %v2999_v33 }
  0x96   : > { %1041 = vmatpush.bf16.msra.mxu0 %v2983_v38  ;;  %1077 = vmatpush.bf16.msra.mxu2 %v3015_v2 }
  0x97   : > { %1060 = vmatpush.bf16.msra.mxu1 %v2987_v42 }
  0x9a   : > { %1042 = vmatpush.bf16.msra.mxu0 %v2971_v50  ;;  %1078 = vmatpush.bf16.msra.mxu2 %v3003_v5 }
  0x9b   : > { %1061 = vmatpush.bf16.msra.mxu1 %v2975_v53 }
  0x9e   : > { %1043 = vmatpush.bf16.msra.mxu0 %v2959_v60  ;;  %1079 = vmatpush.bf16.msra.mxu2 %v2991_v8 }
  0x9f   : > { %1062 = vmatpush.bf16.msra.mxu1 %v2963_v0  ;;  %v4492_v0 = vperm.slane %v4471_v18, 2 }
  0xa1   : > { %1044 = vmatmul.bf16.vlgmr.msra.gmra.mxu0 %v866_v1 }
  0xa2   : > { %1063 = vmatmul.bf16.vlgmr.msra.gmra.mxu1 %v866_v1  ;;  %1080 = vmatpush.bf16.msra.mxu2 %v2979_v11 }
  0xa6   : > { %1081 = vmatpush.bf16.msra.mxu2 %v2967_v16 }
  0xa9   : > { %1082 = vmatmul.bf16.vlgmr.msra.gmra.mxu2 %v866_v1 }
  0xb1   : > { %1049 = vmatmul.bf16.gmra.mxu0 %v867_v17 }
  0xb2   : > { %1068 = vmatmul.bf16.gmra.mxu1 %v867_v17 }
  0xb9   : > { %1087 = vmatmul.bf16.gmra.mxu2 %v867_v17 }
 0x11e   : > { %v1045_v19 = vpop.f32.mrf.mxu0 }
 0x11f   : > { %v1064_v20 = vpop.f32.mrf.mxu1  ;;  %v1046_v28 = vadd.f32 %v1045_v19, %v902_v23 }
 0x120   : > { %v1065_v22 = vadd.f32 %v1064_v20, %v903_v21 }
 0x121   : > { %v1133_v35 = vpack.c.bf16 %v1046_v28, %v1046_v28 }
 0x122   : > { %v1189_v27 = vpack.c.bf16 %v1065_v22, %v1065_v22 }
 0x123   : > { %v1263_v41 = vunpack.c.l.b16 %v1133_v35 }
 0x124   : > { %v1268_v32 = vunpack.c.l.b16 %v1189_v27 }
 0x126   : > { %v1047_v24 = vpop.f32.mrf.mxu0 }
 0x127   : > { %v1066_v25 = vpop.f32.mrf.mxu1  ;;  %v1048_v29 = vadd.f32 %v1047_v24, %v902_v23 }
 0x128   : > { %v1067_v26 = vadd.f32 %v1066_v25, %v903_v21 }
 0x129   : > { %v1134_v36 = vpack.c.bf16 %v1048_v29, %v1048_v29  ;;  %v3459_v40 = vpack.i.bf16 %v1048_v29, %v1046_v28 }
 0x12a   : > { %v3454_v30 = vpack.i.bf16 %v1067_v26, %v1065_v22  ;;  %v1190_v31 = vpack.c.bf16 %v1067_v26, %v1067_v26 }
 0x12b   : > { %v1264_v42 = vunpack.c.l.b16 %v1134_v36 }
 0x12c   : > { %3455 = vrot.lane.b32.xlu2 %v3454_v30, %s4087_s18  ;;  %3445 = vrot.lane.b32.xlu1 %v3454_v30, %s4088_s15  ;;  %v1269_v33 = vunpack.c.l.b16 %v1190_v31  ;;  %v1083_v63 = vpop.f32.mrf.mxu2 }
 0x12d   : > { %3435 = vrot.lane.b32.xlu0 %v3454_v30, %s4089_s16  ;;  %v1265_v44 = vpack.c.b16 %v1264_v42, %v1263_v41  ;;  %v4495_v1 = vadd.f32 %v1083_v63, %v4492_v0 }
 0x12e   : > { %v1270_v34 = vpack.c.b16 %v1269_v33, %v1268_v32  ;;  %v1050_v37 = vpop.f32.mrf.mxu0 }
 0x12f   : > { %v1069_v38 = vpop.f32.mrf.mxu1  ;;  %v1051_v47 = vadd.f32 %v1050_v37, %v902_v23 }
 0x130   : > { %v1276_v39 = vsel %vm1271_vm0, %v1270_v34, 0  ;;  %v1070_v43 = vadd.f32 %v1069_v38, %v903_v21 }
 0x131   : > { %1285 = vmatpush.bf16.xpose.msra.mxu3 %v1276_v39  ;;  %v1141_v54 = vpack.c.bf16 %v1051_v47, %v1051_v47 }
 0x132   : > { %v1197_v50 = vpack.c.bf16 %v1070_v43, %v1070_v43 }
 0x133   : > { %v1384_v59 = vunpack.c.l.b16 %v1141_v54 }
 0x134   : > { %3460 = vrot.lane.b32.xlu2 %v3459_v40, %s4087_s18  ;;  %3450 = vrot.lane.b32.xlu1 %v3459_v40, %s4088_s15  ;;  %v1389_v55 = vunpack.c.l.b16 %v1197_v50  ;;  %v1085_v2 = vpop.f32.mrf.mxu2 }
 0x135   : > { %3440 = vrot.lane.b32.xlu0 %v3459_v40, %s4089_s16  ;;  %v4498_v3 = vadd.f32 %v1085_v2, %v4492_v0 }
 0x136   : > { %v1052_v45 = vpop.f32.mrf.mxu0 }
 0x137   : > { %v1071_v46 = vpop.f32.mrf.mxu1  ;;  %v1053_v48 = vadd.f32 %v1052_v45, %v902_v23  ;;  %v4502_v4 = vpack.i.bf16 %v4498_v3, %v4495_v1 }
 0x138   : > { %v1072_v49 = vadd.f32 %v1071_v46, %v903_v21  ;;  %3052 = vmatmul.msk.bf16.vlgmr.msra.gmra.mxu3 %vm1271_vm0, %v1265_v44 }
 0x139   : > { %v3474_v51 = vpack.i.bf16 %v1053_v48, %v1051_v47  ;;  %v1142_v57 = vpack.c.bf16 %v1053_v48, %v1053_v48 }
 0x13a   : > { %v3469_v52 = vpack.i.bf16 %v1072_v49, %v1070_v43  ;;  %v1198_v53 = vpack.c.bf16 %v1072_v49, %v1072_v49 }
 0x13b   : > { %v1385_v61 = vunpack.c.l.b16 %v1142_v57 }
 0x13c   : > { %3470 = vrot.lane.b32.xlu1 %v3469_v52, %s4087_s18  ;;  %v1390_v56 = vunpack.c.l.b16 %v1198_v53  ;;  %3475 = vrot.lane.b32.xlu2 %v3474_v51, %s4088_s15 }
 0x13d   : > { %3465 = vrot.lane.b32.xlu0 %v3469_v52, %s4088_s15  ;;  %v1386_v62 = vpack.c.b16 %v1385_v61, %v1384_v59 }
 0x13e   : > { %v1391_v58 = vpack.c.b16 %v1390_v56, %v1389_v55 }
 0x140   : > { %v1396_v60 = vsel %vm1271_vm0, %v1391_v58, 0 }
 0x141   : > { %1405 = vmatpush.bf16.xpose.msrb.mxu1 %v1396_v60 }
 0x144   : > { %3485 = vrot.lane.b32.xlu1 %v3469_v52, %s4089_s16  ;;  %3490 = vrot.lane.b32.xlu2 %v3474_v51, %s4089_s16 }
 0x145   : > { %3480 = vrot.lane.b32.xlu0 %v3474_v51, %s4087_s18 }
 0x148   : > { %3056 = vmatmul.msk.bf16.vlgmr.msrb.gmra.mxu1 %vm1271_vm0, %v1386_v62 }
 0x14c   : > { %3500 = vrot.lane.b32.xlu2 %v4502_v4, %s4087_s18  ;;  %3495 = vrot.lane.b32.xlu1 %v4502_v4, %s4088_s15 }
 0x186   : > { %v3456_v5 = vpop.permute.xlu2 %3455 }
 0x187   : > { %v3458_v7 = vunpack.i.h.bf16 %v3456_v5  ;;  %v3457_v8 = vunpack.i.l.bf16 %v3456_v5 }
 0x189   : > { %v1196_v18 = vpack.c.bf16 %v3458_v7, %v3458_v7  ;;  %v1195_v19 = vpack.c.bf16 %v3457_v8, %v3457_v8 }
 0x18b   : > { %v1360_v28 = vunpack.c.l.b16 %v1196_v18  ;;  %v1359_v29 = vunpack.c.l.b16 %v1195_v19 }
 0x18d   : > { %v1361_v37 = vpack.c.b16 %v1360_v28, %v1359_v29 }
 0x18e   : > { %v4506_v24 = vpop.permute.xlu2 %3460 }
 0x18f   : > { %v1366_v44 = vsel %vm1271_vm0, %v1361_v37, 0 }
 0x196   : > { %v3476_v40 = vpop.permute.xlu2 %3475 }
 0x197   : > { %v3478_v49 = vunpack.i.h.bf16 %v3476_v40  ;;  %v3477_v50 = vunpack.i.l.bf16 %v3476_v40 }
 0x199   : > { %v1146_v59 = vpack.c.bf16 %v3478_v49, %v3478_v49  ;;  %v1145_v60 = vpack.c.bf16 %v3477_v50, %v3477_v50 }
 0x19e   : > { %v3446_v6 = vpop.permute.xlu1 %3445  ;;  %v3491_v5 = vpop.permute.xlu2 %3490 }
 0x19f   : > { %v3448_v9 = vunpack.i.h.bf16 %v3446_v6  ;;  %v3447_v10 = vunpack.i.l.bf16 %v3446_v6  ;;  %v3436_v11 = vpop.permute.xlu0 %3435  ;;  %v3492_v18 = vunpack.i.l.bf16 %v3491_v5 }
 0x1a0   : > { %v3438_v12 = vunpack.i.h.bf16 %v3436_v11  ;;  %v3437_v13 = vunpack.i.l.bf16 %v3436_v11  ;;  %v1445_v11 = vunpack.c.l.b16 %v1146_v59 }
 0x1a1   : > { %v1194_v14 = vpack.c.bf16 %v3448_v9, %v3448_v9  ;;  %v1193_v15 = vpack.c.bf16 %v3447_v10, %v3447_v10  ;;  %v1143_v29 = vpack.c.bf16 %v3492_v18, %v3492_v18 }
 0x1a2   : > { %v1192_v16 = vpack.c.bf16 %v3438_v12, %v3438_v12  ;;  %v1191_v17 = vpack.c.bf16 %v3437_v13, %v3437_v13  ;;  %v1444_v12 = vunpack.c.l.b16 %v1145_v60 }
 0x1a3   : > { %v1330_v20 = vunpack.c.l.b16 %v1194_v14  ;;  %v1329_v21 = vunpack.c.l.b16 %v1193_v15 }
 0x1a4   : > { %v1300_v22 = vunpack.c.l.b16 %v1192_v16  ;;  %v1299_v23 = vunpack.c.l.b16 %v1191_v17  ;;  %v3493_v17 = vunpack.i.h.bf16 %v3491_v5 }
 0x1a5   : > { %v1331_v25 = vpack.c.b16 %v1330_v20, %v1329_v21 }
 0x1a6   : > { %v3451_v26 = vpop.permute.xlu1 %3450  ;;  %v1301_v27 = vpack.c.b16 %v1300_v22, %v1299_v23  ;;  %v1144_v28 = vpack.c.bf16 %v3493_v17, %v3493_v17 }
 0x1a7   : > { %v3441_v30 = vpop.permute.xlu0 %3440  ;;  %v1336_v31 = vsel %vm1271_vm0, %v1331_v25, 0  ;;  %v3453_v51 = vunpack.i.h.bf16 %v3451_v26  ;;  %v3452_v52 = vunpack.i.l.bf16 %v3451_v26  ;;  %v1446_v25 = vpack.c.b16 %v1445_v11, %v1444_v12 }
 0x1a8   : > { %v3443_v32 = vunpack.i.h.bf16 %v3441_v30  ;;  %v3442_v33 = vunpack.i.l.bf16 %v3441_v30  ;;  %v1306_v34 = vsel %vm1271_vm0, %v1301_v27, 0  ;;  %v1415_v37 = vunpack.c.l.b16 %v1144_v28 }
 0x1a9   : > { %1315 = vmatpush.bf16.xpose.msrb.mxu3 %v1306_v34  ;;  %v1138_v61 = vpack.c.bf16 %v3453_v51, %v3453_v51  ;;  %v1137_v62 = vpack.c.bf16 %v3452_v52, %v3452_v52  ;;  %v1246_v34 = vpack.c.bf16 %v4498_v3, %v4498_v3 }
 0x1aa   : > { %v1136_v35 = vpack.c.bf16 %v3443_v32, %v3443_v32  ;;  %v1135_v36 = vpack.c.bf16 %v3442_v33, %v3442_v33  ;;  %v1245_v33 = vpack.c.bf16 %v4495_v1, %v4495_v1 }
 0x1ab   : > { %v1325_v15 = vunpack.c.l.b16 %v1138_v61  ;;  %v1324_v16 = vunpack.c.l.b16 %v1137_v62  ;;  %v1719_v40 = vunpack.c.l.b16 %v1246_v34 }
 0x1ac   : > { %v1295_v38 = vunpack.c.l.b16 %v1136_v35  ;;  %v1294_v39 = vunpack.c.l.b16 %v1135_v36  ;;  %v3463_v35 = vunpack.i.h.bf16 %v4506_v24  ;;  %v3462_v36 = vunpack.i.l.bf16 %v4506_v24 }
 0x1ad   : > { %v1326_v27 = vpack.c.b16 %v1325_v15, %v1324_v16 }
 0x1ae   : > { %v1296_v41 = vpack.c.b16 %v1295_v38, %v1294_v39  ;;  %v3471_v42 = vpop.permute.xlu1 %3470  ;;  %v1414_v38 = vunpack.c.l.b16 %v1143_v29  ;;  %v1718_v39 = vunpack.c.l.b16 %v1245_v33  ;;  %v1139_v3 = vpack.c.bf16 %v3462_v36, %v3462_v36 }
 0x1af   : > { %v3466_v43 = vpop.permute.xlu0 %3465  ;;  %v3473_v45 = vunpack.i.h.bf16 %v3471_v42  ;;  %v3472_v46 = vunpack.i.l.bf16 %v3471_v42 }
 0x1b0   : > { %v3468_v47 = vunpack.i.h.bf16 %v3466_v43  ;;  %v3467_v48 = vunpack.i.l.bf16 %v3466_v43  ;;  %3053 = vmatmul.msk.bf16.vlgmr.msrb.gmra.mxu3 %vm1271_vm0, %v1296_v41  ;;  %v1720_v1 = vpack.c.b16 %v1719_v40, %v1718_v39 }
 0x1b1   : > { %1345 = vmatpush.bf16.xpose.msra.mxu3 %v1336_v31  ;;  %v1204_v55 = vpack.c.bf16 %v3473_v45, %v3473_v45  ;;  %v1203_v56 = vpack.c.bf16 %v3472_v46, %v3472_v46  ;;  %v1416_v45 = vpack.c.b16 %v1415_v37, %v1414_v38 }
 0x1b2   : > { %v1202_v53 = vpack.c.bf16 %v3468_v47, %v3468_v47  ;;  %v1201_v54 = vpack.c.bf16 %v3467_v48, %v3467_v48  ;;  %1732 = vmatpush.bf16.msrb.mxu0 %v1720_v1  ;;  %v1354_v48 = vunpack.c.l.b16 %v1139_v3 }
 0x1b3   : > { %v1480_v8 = vunpack.c.l.b16 %v1204_v55  ;;  %v1479_v9 = vunpack.c.l.b16 %v1203_v56 }
 0x1b4   : > { %v1450_v57 = vunpack.c.l.b16 %v1202_v53  ;;  %v1449_v58 = vunpack.c.l.b16 %v1201_v54  ;;  %v3501_v54 = vpop.permute.xlu2 %3500 }
 0x1b5   : > { %v1481_v22 = vpack.c.b16 %v1480_v8, %v1479_v9 }
 0x1b6   : > { %v3486_v63 = vpop.permute.xlu1 %3485  ;;  %v1451_v2 = vpack.c.b16 %v1450_v57, %v1449_v58  ;;  %v3503_v57 = vunpack.i.h.bf16 %v3501_v54  ;;  %v3502_v58 = vunpack.i.l.bf16 %v3501_v54 }
 0x1b7   : > { %v3488_v6 = vunpack.i.h.bf16 %v3486_v63  ;;  %v3487_v7 = vunpack.i.l.bf16 %v3486_v63  ;;  %v1486_v32 = vsel %vm1271_vm0, %v1481_v22, 0  ;;  %v3481_v52 = vpop.permute.xlu0 %3480 }
 0x1b8   : > { %v1456_v10 = vsel %vm1271_vm0, %v1451_v2, 0  ;;  %v3483_v55 = vunpack.i.h.bf16 %v3481_v52  ;;  %v3482_v56 = vunpack.i.l.bf16 %v3481_v52  ;;  %v1252_v60 = vpack.c.bf16 %v3503_v57, %v3503_v57 }
 0x1b9   : > { %1375 = vmatpush.bf16.xpose.msrb.mxu3 %v1366_v44  ;;  %v1200_v13 = vpack.c.bf16 %v3488_v6, %v3488_v6  ;;  %v1199_v14 = vpack.c.bf16 %v3487_v7, %v3487_v7  ;;  %1465 = vmatpush.bf16.xpose.msrb.mxu2 %v1456_v10  ;;  %v1140_v44 = vpack.c.bf16 %v3463_v35, %v3463_v35  ;;  %v1088_v10 = vpop.f32.mrf.mxu2 }
 0x1ba   : > { %v1251_v61 = vpack.c.bf16 %v3502_v58, %v3502_v58  ;;  %v1148_v62 = vpack.c.bf16 %v3483_v55, %v3483_v55  ;;  %v1147_v63 = vpack.c.bf16 %v3482_v56, %v3482_v56  ;;  %v1803_v2 = vunpack.c.l.b16 %v1252_v60 }
 0x1bb   : > { %v1420_v19 = vunpack.c.l.b16 %v1200_v13  ;;  %v1419_v20 = vunpack.c.l.b16 %v1199_v14  ;;  %v1287_v21 = vpop.f32.mrf.mxu3  ;;  %v1355_v47 = vunpack.c.l.b16 %v1140_v44  ;;  %v4545_v12 = vadd.f32 %v1088_v10, %v4492_v0 }
 0x1bc   : > { %v4513_v23 = vmul.f32 0.17677669, %v1287_v21  ;;  %v1802_v5 = vunpack.c.l.b16 %v1251_v61  ;;  %v1475_v7 = vunpack.c.l.b16 %v1148_v62  ;;  %v1474_v8 = vunpack.c.l.b16 %v1147_v63 }
 0x1bd   : > { %v1421_v26 = vpack.c.b16 %v1420_v19, %v1419_v20  ;;  %v1356_v51 = vpack.c.b16 %v1355_v47, %v1354_v48  ;;  %v1253_v15 = vpack.c.bf16 %v4545_v12, %v4545_v12 }
 0x1be   : > { %v1519_v30 = vsel %vm1518_vm1, %v4513_v23, -inf  ;;  %v1804_v6 = vpack.c.b16 %v1803_v2, %v1802_v5  ;;  %v1476_v9 = vpack.c.b16 %v1475_v7, %v1474_v8  ;;  %v3496_v52 = vpop.permute.xlu1 %3495 }
 0x1bf   : > { %1520 = vmax.xlane.f32.xlu2 %v1519_v30  ;;  %v1426_v31 = vsel %vm1271_vm0, %v1421_v26, 0  ;;  %v1830_v19 = vunpack.c.l.b16 %v1253_v15  ;;  %v3498_v54 = vunpack.i.h.bf16 %v3496_v52  ;;  %v3497_v55 = vunpack.i.l.bf16 %v3496_v52 }
 0x1c0   : > { %3054 = vmatmul.msk.bf16.vlgmr.msra.gmra.mxu3 %vm1271_vm0, %v1326_v27  ;;  %3058 = vmatmul.msk.bf16.vlgmr.msrb.gmra.mxu2 %vm1271_vm0, %v1446_v25 }
 0x1c1   : > { %1495 = vmatpush.bf16.xpose.msra.mxu3 %v1486_v32  ;;  %1435 = vmatpush.bf16.xpose.msra.mxu1 %v1426_v31  ;;  %v1090_v11 = vpop.f32.mrf.mxu2  ;;  %v1250_v56 = vpack.c.bf16 %v3498_v54, %v3498_v54  ;;  %v1249_v57 = vpack.c.bf16 %v3497_v55, %v3497_v55 }
 0x1c2   : > { %v4548_v13 = vadd.f32 %v1090_v11, %v4492_v0 }
 0x1c3   : > { %v1289_v41 = vpop.f32.mrf.mxu3  ;;  %v1775_v58 = vunpack.c.l.b16 %v1250_v56 }
 0x1c4   : > { %v4529_v42 = vmul.f32 0.17677669, %v1289_v41  ;;  %v1254_v17 = vpack.c.bf16 %v4548_v13, %v4548_v13 }
 0x1c5   : > { %v1407_v43 = vpop.f32.mrf.mxu1 }
 0x1c6   : > { %v1522_v24 = vsel %vm1518_vm1, %v4529_v42, -inf  ;;  %v4534_v46 = vmul.f32 0.17677669, %v1407_v43  ;;  %v1831_v20 = vunpack.c.l.b16 %v1254_v17 }
 0x1c7   : > { %1523 = vmax.xlane.f32.xlu0 %v1522_v24 }
 0x1c8   : > { %3057 = vmatmul.msk.bf16.vlgmr.msra.gmra.mxu1 %vm1271_vm0, %v1416_v45  ;;  %v1543_v49 = vsel %vm1518_vm1, %v4534_v46, -inf  ;;  %v1832_v0 = vpack.c.b16 %v1831_v20, %v1830_v19 }
 0x1ca   : > { %1844 = vmatpush.bf16.msra.mxu0 %v1832_v0 }
 0x1cd   : > { %v1409_v50 = vpop.f32.mrf.mxu1 }
 0x1ce   : > { %v4539_v53 = vmul.f32 0.17677669, %v1409_v50 }
 0x1cf   : > { %1544 = vmax.xlane.f32.xlu0 %v1543_v49 }
 0x1d0   : > { %3055 = vmatmul.msk.bf16.vlgmr.msrb.gmra.mxu3 %vm1271_vm0, %v1356_v51  ;;  %v1546_v59 = vsel %vm1518_vm1, %v4539_v53, -inf }
 0x1d1   : > { %1816 = vmatpush.bf16.msrb.mxu3 %v1804_v6 }
 0x1d7   : > { %1547 = vmax.xlane.f32.xlu0 %v1546_v59  ;;  %v1774_v59 = vunpack.c.l.b16 %v1249_v57 }
 0x1d9   : > { %v1776_v60 = vpack.c.b16 %v1775_v58, %v1774_v59 }
 0x1db   : > { %1788 = vmatpush.bf16.msra.mxu2 %v1776_v60 }
 0x1e0   : > { %3059 = vmatmul.msk.bf16.vlgmr.msra.gmra.mxu3 %vm1271_vm0, %v1476_v9 }
 0x232   : > { %v4616_v17 = vpop.xlane.xlu2 %1520 }
 0x233   : > { %v1317_v14 = vpop.f32.mrf.mxu3 }
 0x234   : > { %v4552_v16 = vmul.f32 0.17677669, %v1317_v14 }
 0x236   : > { %v1525_v18 = vsel %vm1518_vm1, %v4552_v16, -inf }
 0x237   : > { %1526 = vmax.xlane.f32.xlu0 %v1525_v18 }
 0x23a   : > { %v4602_v62 = vpop.xlane.xlu0 %1523 }
 0x23b   : > { %v1319_v21 = vpop.f32.mrf.mxu3 }
 0x23c   : > { %v4558_v22 = vmul.f32 0.17677669, %v1319_v21 }
 0x23e   : > { %v1528_v25 = vsel %vm1518_vm1, %v4558_v22, -inf }
 0x23f   : > { %1529 = vmax.xlane.f32.xlu1 %v1528_v25 }
 0x242   : > { %v4606_v2 = vpop.xlane.xlu0 %1544 }
 0x243   : > { %v1467_v26 = vpop.f32.mrf.mxu2  ;;  %v1347_v27 = vpop.f32.mrf.mxu3 }
 0x244   : > { %v4562_v28 = vmul.f32 0.17677669, %v1467_v26  ;;  %v4570_v34 = vmul.f32 0.17677669, %v1347_v27 }
 0x245   : > { %v1437_v29 = vpop.f32.mrf.mxu1 }
 0x246   : > { %v4564_v30 = vmul.f32 0.17677669, %v1437_v29  ;;  %v1555_v31 = vsel %vm1518_vm1, %v4562_v28, -inf  ;;  %v1531_v38 = vsel %vm1518_vm1, %v4570_v34, -inf }
 0x247   : > { %1556 = vmax.xlane.f32.xlu2 %v1555_v31 }
 0x248   : > { %v1549_v32 = vsel %vm1518_vm1, %v4564_v30, -inf }
 0x249   : > { %1550 = vmax.xlane.f32.xlu0 %v1549_v32 }
 0x24a   : > { %v4608_v5 = vpop.xlane.xlu0 %1547 }
 0x24b   : > { %v1349_v33 = vpop.f32.mrf.mxu3 }
 0x24c   : > { %v4578_v40 = vmul.f32 0.17677669, %v1349_v33 }
 0x24d   : > { %v1439_v35 = vpop.f32.mrf.mxu1 }
 0x24e   : > { %v4572_v36 = vmul.f32 0.17677669, %v1439_v35  ;;  %v1534_v43 = vsel %vm1518_vm1, %v4578_v40, -inf }
 0x250   : > { %v1552_v37 = vsel %vm1518_vm1, %v4572_v36, -inf }
 0x251   : > { %1553 = vmax.xlane.f32.xlu1 %v1552_v37  ;;  %1532 = vmax.xlane.f32.xlu0 %v1531_v38 }
 0x253   : > { %v1377_v39 = vpop.f32.mrf.mxu3 }
 0x254   : > { %v4580_v41 = vmul.f32 0.17677669, %v1377_v39 }
 0x256   : > { %v1537_v1 = vsel %vm1518_vm1, %v4580_v41, -inf }
 0x257   : > { %1538 = vmax.xlane.f32.xlu2 %v1537_v1 }
 0x259   : > { %1535 = vmax.xlane.f32.xlu1 %v1534_v43 }
 0x25b   : > { %v1379_v44 = vpop.f32.mrf.mxu3 }
 0x25c   : > { %v4586_v3 = vmul.f32 0.17677669, %v1379_v44 }
 0x25e   : > { %v1540_v45 = vsel %vm1518_vm1, %v4586_v3, -inf }
 0x25f   : > { %1541 = vmax.xlane.f32.xlu2 %v1540_v45 }
 0x263   : > { %v1497_v24 = vpop.f32.mrf.mxu3 }
 0x264   : > { %v4590_v47 = vmul.f32 0.17677669, %v1497_v24 }
 0x265   : > { %3505 = vrot.lane.b32.xlu0 %v4502_v4, %s4089_s16  ;;  %v1469_v4 = vpop.f32.mrf.mxu2 }
 0x266   : > { %v1561_v48 = vsel %vm1518_vm1, %v4590_v47, -inf  ;;  %v4600_v61 = vmul.f32 0.17677669, %v1469_v4 }
 0x267   : > { %1562 = vmax.xlane.f32.xlu1 %v1561_v48 }
 0x268   : > { %v1558_v63 = vsel %vm1518_vm1, %v4600_v61, -inf }
 0x26b   : > { %v1499_v49 = vpop.f32.mrf.mxu3 }
 0x26c   : > { %v4596_v50 = vmul.f32 0.17677669, %v1499_v49 }
 0x26e   : > { %v1564_v51 = vsel %vm1518_vm1, %v4596_v50, -inf }
 0x26f   : > { %1565 = vmax.xlane.f32.xlu2 %v1564_v51 }
 0x28f   : > { %1559 = vmax.xlane.f32.xlu0 %v1558_v63 }
 0x2aa   : > { %v1527_v6 = vpop.xlane.xlu0 %1526 }
 0x2ab   : > { %v1569_v7 = vsub.f32 %v4552_v16, %v1527_v6 }
 0x2ad   : > { %v1587_v8 = vmul.f32 1.442695, %v1569_v7 }
 0x2af   : > { %3560 = vpow2.f32 %v1587_v8 }
 0x2b2   : > { %v1530_v9 = vpop.xlane.xlu1 %1529 }
 0x2b3   : > { %v1570_v10 = vsub.f32 %v4558_v22, %v1530_v9 }
 0x2b5   : > { %v4612_v11 = vpop.eup %3560  ;;  %v1589_v14 = vmul.f32 1.442695, %v1570_v10 }
 0x2b6   : > { %v1621_v15 = vsel %vm1518_vm1, %v4612_v11, 0.0 }
 0x2b7   : > { %3562 = vpow2.f32 %v1589_v14  ;;  %1622 = vadd.xlane.f32.xlu2 %v1621_v15 }
 0x2ba   : > { %v1557_v22 = vpop.xlane.xlu2 %1556 }
 0x2bb   : > { %v1579_v31 = vsub.f32 %v4562_v28, %v1557_v22 }
 0x2bc   : > { %v1551_v18 = vpop.xlane.xlu0 %1550 }
 0x2bd   : > { %v4618_v19 = vpop.eup %3562  ;;  %v1577_v16 = vsub.f32 %v4564_v30, %v1551_v18  ;;  %v1607_v35 = vmul.f32 1.442695, %v1579_v31  ;;  %v1568_v31 = vsub.f32 %v4529_v42, %v4602_v62 }
 0x2be   : > { %v1624_v20 = vsel %vm1518_vm1, %v4618_v19, 0.0 }
 0x2bf   : > { %v1603_v21 = vmul.f32 1.442695, %v1577_v16  ;;  %1625 = vadd.xlane.f32.xlu0 %v1624_v20 }
 0x2c1   : > { %3564 = vpow2.f32 %v1603_v21 }
 0x2c4   : > { %v1554_v0 = vpop.xlane.xlu1 %1553  ;;  %v1533_v25 = vpop.xlane.xlu0 %1532 }
 0x2c5   : > { %v1571_v26 = vsub.f32 %v4570_v34, %v1533_v25  ;;  %v1578_v34 = vsub.f32 %v4572_v36, %v1554_v0 }
 0x2c7   : > { %v4624_v27 = vpop.eup %3564  ;;  %v1591_v29 = vmul.f32 1.442695, %v1571_v26  ;;  %v1605_v44 = vmul.f32 1.442695, %v1578_v34 }
 0x2c8   : > { %v1645_v32 = vsel %vm1518_vm1, %v4624_v27, 0.0 }
 0x2c9   : > { %1646 = vadd.xlane.f32.xlu2 %v1645_v32  ;;  %3566 = vpow2.f32 %v1591_v29  ;;  %v1585_v32 = vmul.f32 1.442695, %v1568_v31 }
 0x2ca   : > { %v1539_v30 = vpop.xlane.xlu2 %1538 }
 0x2cb   : > { %v1573_v33 = vsub.f32 %v4580_v41, %v1539_v30 }
 0x2cc   : > { %v1536_v37 = vpop.xlane.xlu1 %1535 }
 0x2cd   : > { %v1595_v38 = vmul.f32 1.442695, %v1573_v33  ;;  %v1572_v39 = vsub.f32 %v4578_v40, %v1536_v37 }
 0x2cf   : > { %3568 = vpow2.f32 %v1595_v38  ;;  %v1593_v1 = vmul.f32 1.442695, %v1572_v39  ;;  %v4632_v43 = vpop.eup %3566 }
 0x2d0   : > { %3570 = vpow2.f32 %v1607_v35  ;;  %v1627_v28 = vsel %vm1518_vm1, %v4632_v43, 0.0 }
 0x2d1   : > { %3572 = vpow2.f32 %v1593_v1  ;;  %1628 = vadd.xlane.f32.xlu1 %v1627_v28  ;;  %v1567_v1 = vsub.f32 %v4513_v23, %v4616_v17 }
 0x2d2   : > { %v1542_v41 = vpop.xlane.xlu2 %1541  ;;  %3574 = vpow2.f32 %v1605_v44 }
 0x2d3   : > { %v1574_v49 = vsub.f32 %v4586_v3, %v1542_v41 }
 0x2d5   : > { %v4636_v45 = vpop.eup %3568  ;;  %v1597_v60 = vmul.f32 1.442695, %v1574_v49 }
 0x2d6   : > { %v4638_v24 = vpop.eup %3570  ;;  %v1633_v40 = vsel %vm1518_vm1, %v4636_v45, 0.0 }
 0x2d7   : > { %v4642_v36 = vpop.eup %3572  ;;  %v3506_v48 = vpop.permute.xlu0 %3505  ;;  %1634 = vadd.xlane.f32.xlu0 %v1633_v40  ;;  %v1651_v55 = vsel %vm1518_vm1, %v4638_v24, 0.0  ;;  %v1583_v40 = vmul.f32 1.442695, %v1567_v1 }
 0x2d8   : > { %v3508_v51 = vunpack.i.h.bf16 %v3506_v48  ;;  %v3507_v52 = vunpack.i.l.bf16 %v3506_v48  ;;  %v1630_v54 = vsel %vm1518_vm1, %v4642_v36, 0.0  ;;  %v4650_v6 = vpop.eup %3574 }
 0x2d9   : > { %1631 = vadd.xlane.f32.xlu2 %v1630_v54  ;;  %1652 = vadd.xlane.f32.xlu1 %v1651_v55  ;;  %v1648_v8 = vsel %vm1518_vm1, %v4650_v6, 0.0 }
 0x2da   : > { %v1248_v56 = vpack.c.bf16 %v3508_v51, %v3508_v51  ;;  %v1247_v57 = vpack.c.bf16 %v3507_v52, %v3507_v52  ;;  %v1563_v58 = vpop.xlane.xlu1 %1562 }
 0x2db   : > { %v1581_v59 = vsub.f32 %v4590_v47, %v1563_v58 }
 0x2dc   : > { %v1747_v4 = vunpack.c.l.b16 %v1248_v56  ;;  %v1746_v63 = vunpack.c.l.b16 %v1247_v57 }
 0x2dd   : > { %v1611_v3 = vmul.f32 1.442695, %v1581_v59 }
 0x2de   : > { %v1748_v7 = vpack.c.b16 %v1747_v4, %v1746_v63 }
 0x2df   : > { %3576 = vpow2.f32 %v1611_v3 }
 0x2e0   : > { %3578 = vpow2.f32 %v1597_v60  ;;  %1760 = vmatpush.bf16.msrb.mxu1 %v1748_v7 }
 0x2e1   : > { %1649 = vadd.xlane.f32.xlu1 %v1648_v8 }
 0x2e2   : > { %v1566_v9 = vpop.xlane.xlu2 %1565 }
 0x2e3   : > { %v1582_v10 = vsub.f32 %v4596_v50, %v1566_v9  ;;  %v3519_v50 = vpack.i.bf16 %v4548_v13, %v4545_v12  ;;  %v1575_v13 = vsub.f32 %v4534_v46, %v4606_v2 }
 0x2e5   : > { %v4655_v14 = vpop.eup %3576  ;;  %v1613_v47 = vmul.f32 1.442695, %v1582_v10  ;;  %v1599_v30 = vmul.f32 1.442695, %v1575_v13 }
 0x2e6   : > { %v4657_v15 = vpop.eup %3578  ;;  %v1657_v18 = vsel %vm1518_vm1, %v4655_v14, 0.0 }
 0x2e7   : > { %1658 = vadd.xlane.f32.xlu0 %v1657_v18  ;;  %3580 = vpow2.f32 %v1613_v47  ;;  %v1636_v16 = vsel %vm1518_vm1, %v4657_v15, 0.0 }
 0x2e9   : > { %1637 = vadd.xlane.f32.xlu1 %v1636_v16 }
 0x2ed   : > { %v4663_v20 = vpop.eup %3580 }
 0x2ee   : > { %v1660_v21 = vsel %vm1518_vm1, %v4663_v20, 0.0 }
 0x2f1   : > { %1661 = vadd.xlane.f32.xlu1 %v1660_v21 }
 0x2fb   : > { %3520 = vrot.lane.b32.xlu0 %v3519_v50, %s4089_s16 }
 0x302   : > { %v1560_v22 = vpop.xlane.xlu0 %1559 }
 0x303   : > { %v1580_v0 = vsub.f32 %v4600_v61, %v1560_v22 }
 0x305   : > { %v1609_v25 = vmul.f32 1.442695, %v1580_v0 }
 0x307   : > { %3582 = vpow2.f32 %v1609_v25 }
 0x308   : > { %3584 = vpow2.f32 %v1585_v32 }
 0x309   : > { %3586 = vpow2.f32 %v1599_v30 }
 0x30a   : > { %3515 = vrot.lane.b32.xlu1 %v3519_v50, %s4087_s18 }
 0x30d   : > { %v4672_v26 = vpop.eup %3582 }
 0x30e   : > { %v1654_v29 = vsel %vm1518_vm1, %v4672_v26, 0.0  ;;  %v4678_v12 = vpop.eup %3584 }
 0x30f   : > { %1655 = vadd.xlane.f32.xlu2 %v1654_v29  ;;  %v1618_v61 = vsel %vm1518_vm1, %v4678_v12, 0.0  ;;  %v4685_v35 = vpop.eup %3586 }
 0x310   : > { %v1639_v37 = vsel %vm1518_vm1, %v4685_v35, 0.0 }
 0x325   : > { %1619 = vadd.xlane.f32.xlu0 %v1618_v61 }
 0x327   : > { %3510 = vrot.lane.b32.xlu2 %v3519_v50, %s4088_s15 }
 0x32a   : > { %v1623_v33 = vpop.xlane.xlu2 %1622 }
 0x32b   : > { %3588 = vrcp.f32 %v1623_v33 }
 0x331   : > { %v3589_v62 = vpop.eup %3588 }
 0x332   : > { %v1626_v42 = vpop.xlane.xlu0 %1625  ;;  %v1681_v46 = vmul.f32 %v3589_v62, %v4612_v11  ;;  %v1576_v11 = vsub.f32 %v4539_v53, %v4608_v5 }
 0x333   : > { %3590 = vrcp.f32 %v1626_v42 }
 0x334   : > { %1640 = vadd.xlane.f32.xlu1 %v1639_v37  ;;  %v1697_v38 = vpack.c.bf16 %v1681_v46, %v1681_v46  ;;  %3592 = vpow2.f32 %v1583_v40  ;;  %v1601_v51 = vmul.f32 1.442695, %v1576_v11 }
 0x336   : > { %v1741_v28 = vunpack.c.l.b16 %v1697_v38 }
 0x339   : > { %v3591_v2 = vpop.eup %3590 }
 0x33a   : > { %v1682_v39 = vmul.f32 %v3591_v2, %v4618_v19  ;;  %v4696_v52 = vpop.eup %3592 }
 0x33b   : > { %v1615_v23 = vsel %vm1518_vm1, %v4696_v52, 0.0 }
 0x33c   : > { %v1698_v34 = vpack.c.bf16 %v1682_v39, %v1682_v39  ;;  %v1647_v48 = vpop.xlane.xlu2 %1646 }
 0x33e   : > { %v1742_v44 = vunpack.c.l.b16 %v1698_v34 }
 0x340   : > { %v1743_v41 = vpack.c.b16 %v1742_v44, %v1741_v28 }
 0x342   : > { %3061 = vmatmul.msk.bf16.vlgmr.msrb.gmra.mxu1 %vm1518_vm1, %v1743_v41 }
 0x344   : > { %v1629_v49 = vpop.xlane.xlu1 %1628 }
 0x345   : > { %3594 = vrcp.f32 %v1629_v49 }
 0x34a   : > { %v1635_v58 = vpop.xlane.xlu0 %1634 }
 0x34b   : > { %v3595_v54 = vpop.eup %3594 }
 0x34c   : > { %v1632_v19 = vpop.xlane.xlu2 %1631  ;;  %v4698_v55 = vpop.xlane.xlu1 %1652  ;;  %v1683_v17 = vmul.f32 %v3595_v54, %v4632_v43 }
 0x34d   : > { %3596 = vrcp.f32 %v1632_v19 }
 0x34e   : > { %3598 = vpow2.f32 %v1601_v51  ;;  %v1699_v53 = vpack.c.bf16 %v1683_v17, %v1683_v17 }
 0x34f   : > { %3600 = vrcp.f32 %v1635_v58 }
 0x350   : > { %1616 = vadd.xlane.f32.xlu2 %v1615_v23  ;;  %v1769_v63 = vunpack.c.l.b16 %v1699_v53 }
 0x353   : > { %v3597_v56 = vpop.eup %3596 }
 0x354   : > { %v4703_v57 = vpop.eup %3598  ;;  %v1684_v5 = vmul.f32 %v3597_v56, %v4642_v36  ;;  %v1650_v59 = vpop.xlane.xlu1 %1649 }
 0x355   : > { %v1642_v4 = vsel %vm1518_vm1, %v4703_v57, 0.0  ;;  %v3601_v8 = vpop.eup %3600 }
 0x356   : > { %v1700_v60 = vpack.c.bf16 %v1684_v5, %v1684_v5  ;;  %v1685_v9 = vmul.f32 %v3601_v8, %v4636_v45 }
 0x358   : > { %v1770_v3 = vunpack.c.l.b16 %v1700_v60  ;;  %1643 = vadd.xlane.f32.xlu2 %v1642_v4  ;;  %v1701_v10 = vpack.c.bf16 %v1685_v9, %v1685_v9 }
 0x35a   : > { %v1771_v7 = vpack.c.b16 %v1770_v3, %v1769_v63  ;;  %v1659_v47 = vpop.xlane.xlu0 %1658  ;;  %v1797_v50 = vunpack.c.l.b16 %v1701_v10 }
 0x35c   : > { %3062 = vmatmul.msk.bf16.vlgmr.msra.gmra.mxu2 %vm1518_vm1, %v1771_v7  ;;  %v1638_v43 = vpop.xlane.xlu1 %1637 }
 0x35d   : > { %3602 = vrcp.f32 %v1638_v43 }
 0x35e   : > { %3604 = vrcp.f32 %v1650_v59 }
 0x35f   : > { %3606 = vrcp.f32 %v1647_v48 }
 0x363   : > { %v3603_v36 = vpop.eup %3602 }
 0x364   : > { %v1686_v18 = vmul.f32 %v3603_v36, %v4657_v15  ;;  %v3605_v21 = vpop.eup %3604  ;;  %v1662_v30 = vpop.xlane.xlu1 %1661 }
 0x365   : > { %v3607_v0 = vpop.eup %3606  ;;  %v1690_v25 = vmul.f32 %v3605_v21, %v4650_v6  ;;  %3608 = vrcp.f32 %v1662_v30 }
 0x366   : > { %v1702_v16 = vpack.c.bf16 %v1686_v18, %v1686_v18  ;;  %v1689_v31 = vmul.f32 %v3607_v0, %v4624_v27  ;;  %3610 = vrcp.f32 %v1659_v47 }
 0x367   : > { %v1706_v61 = vpack.c.bf16 %v1690_v25, %v1690_v25  ;;  %3612 = vrcp.f32 %v4698_v55 }
 0x368   : > { %v1798_v22 = vunpack.c.l.b16 %v1702_v16  ;;  %v1705_v15 = vpack.c.bf16 %v1689_v31, %v1689_v31 }
 0x369   : > { %v1854_v46 = vunpack.c.l.b16 %v1706_v61 }
 0x36a   : > { %v1799_v29 = vpack.c.b16 %v1798_v22, %v1797_v50  ;;  %v1853_v6 = vunpack.c.l.b16 %v1705_v15 }
 0x36b   : > { %v3609_v27 = vpop.eup %3608 }
 0x36c   : > { %3063 = vmatmul.msk.bf16.vlgmr.msrb.gmra.mxu3 %vm1518_vm1, %v1799_v29  ;;  %v1855_v38 = vpack.c.b16 %v1854_v46, %v1853_v6  ;;  %v3611_v39 = vpop.eup %3610  ;;  %v1694_v34 = vmul.f32 %v3609_v27, %v4663_v20 }
 0x36d   : > { %v3521_v45 = vpop.permute.xlu0 %3520  ;;  %v1693_v1 = vmul.f32 %v3611_v39, %v4655_v14  ;;  %v3613_v20 = vpop.eup %3612 }
 0x36e   : > { %v3523_v32 = vunpack.i.h.bf16 %v3521_v45  ;;  %v3522_v13 = vunpack.i.l.bf16 %v3521_v45  ;;  %v1710_v40 = vpack.c.bf16 %v1694_v34, %v1694_v34  ;;  %v1691_v5 = vmul.f32 %v3613_v20, %v4638_v24  ;;  %v3261_v20 = vld [vmem:[%s4376_s25 + $0x8] sm:$0xff] }
 0x36f   : > { %v1709_v11 = vpack.c.bf16 %v1693_v1, %v1693_v1 }
 0x370   : > { %v1256_v33 = vpack.c.bf16 %v3523_v32, %v3523_v32  ;;  %v1255_v42 = vpack.c.bf16 %v3522_v13, %v3522_v13  ;;  %v1910_v23 = vunpack.c.l.b16 %v1710_v40  ;;  %v1707_v7 = vpack.c.bf16 %v1691_v5, %v1691_v5 }
 0x371   : > { %v1909_v56 = vunpack.c.l.b16 %v1709_v11  ;;  %v3266_v11 = vld [vmem:[%s4376_s25 + $0x30] sm:$0xff] }
 0x372   : > { %v1859_v62 = vunpack.c.l.b16 %v1256_v33  ;;  %v1858_v37 = vunpack.c.l.b16 %v1255_v42  ;;  %v1881_v10 = vunpack.c.l.b16 %v1707_v7 }
 0x373   : > { %v1911_v53 = vpack.c.b16 %v1910_v23, %v1909_v56  ;;  %v3264_v23 = vld [vmem:[%s4376_s25 + $0x20] sm:$0xff]  ;;  %v3262_v56 = vld [vmem:[%s4376_s25 + $0x10] sm:$0xff] }
 0x374   : > { %v1860_v2 = vpack.c.b16 %v1859_v62, %v1858_v37 }
 0x376   : > { %1872 = vmatpush.bf16.msra.mxu1 %v1860_v2 }
 0x379   : > { %3065 = vmatmul.msk.bf16.vlgmr.msra.gmra.mxu1 %vm1518_vm1, %v1855_v38 }
 0x37c   : > { %v3516_v28 = vpop.permute.xlu1 %3515 }
 0x37d   : > { %v3518_v44 = vunpack.i.h.bf16 %v3516_v28  ;;  %v3517_v41 = vunpack.i.l.bf16 %v3516_v28 }
 0x37f   : > { %v1260_v48 = vpack.c.bf16 %v3518_v44, %v3518_v44  ;;  %v1259_v49 = vpack.c.bf16 %v3517_v41, %v3517_v41 }
 0x381   : > { %v1915_v51 = vunpack.c.l.b16 %v1260_v48  ;;  %v1914_v19 = vunpack.c.l.b16 %v1259_v49  ;;  %v3267_v49 = vld [vmem:[%s4376_s25 + $0x38] sm:$0xff] }
 0x382   : > { %v1656_v54 = vpop.xlane.xlu2 %1655 }
 0x383   : > { %3614 = vrcp.f32 %v1656_v54  ;;  %v1916_v17 = vpack.c.b16 %v1915_v51, %v1914_v19  ;;  %v3265_v54 = vld [vmem:[%s4376_s25 + $0x28] sm:$0xff] }
 0x385   : > { %1928 = vmatpush.bf16.msra.mxu3 %v1916_v17  ;;  %v3263_v17 = vld [vmem:[%s4376_s25 + $0x18] sm:$0xff] }
 0x388   : > { %3067 = vmatmul.msk.bf16.vlgmr.msra.gmra.mxu3 %vm1518_vm1, %v1911_v53  ;;  %v3260_v53 = vld [vmem:[%s4376_s25] sm:$0xff] }
 0x389   : > { %v3615_v14 = vpop.eup %3614 }
 0x38a   : > { %v1692_v58 = vmul.f32 %v3615_v14, %v4672_v26  ;;  %v3511_v59 = vpop.permute.xlu2 %3510 }
 0x38b   : > { %v3513_v55 = vunpack.i.h.bf16 %v3511_v59  ;;  %v3512_v60 = vunpack.i.l.bf16 %v3511_v59 }
 0x38c   : > { %v1708_v4 = vpack.c.bf16 %v1692_v58, %v1692_v58 }
 0x38d   : > { %v1258_v63 = vpack.c.bf16 %v3513_v55, %v3513_v55  ;;  %v1257_v3 = vpack.c.bf16 %v3512_v60, %v3512_v60 }
 0x38e   : > { %v1882_v9 = vunpack.c.l.b16 %v1708_v4 }
 0x38f   : > { %v1887_v43 = vunpack.c.l.b16 %v1258_v63  ;;  %v1886_v8 = vunpack.c.l.b16 %v1257_v3 }
 0x390   : > { %v1883_v47 = vpack.c.b16 %v1882_v9, %v1881_v10 }
 0x391   : > { %v1888_v36 = vpack.c.b16 %v1887_v43, %v1886_v8 }
 0x393   : > { %1900 = vmatpush.bf16.msrb.mxu2 %v1888_v36 }
 0x396   : > { %3066 = vmatmul.msk.bf16.vlgmr.msrb.gmra.mxu2 %vm1518_vm1, %v1883_v47 }
 0x398   : > { %v1620_v18 = vpop.xlane.xlu0 %1619 }
 0x399   : > { %3616 = vrcp.f32 %v1620_v18 }
 0x39f   : > { %v3617_v16 = vpop.eup %3616 }
 0x3a0   : > { %v1680_v21 = vmul.f32 %v3617_v16, %v4678_v12 }
 0x3a2   : > { %v1696_v25 = vpack.c.bf16 %v1680_v21, %v1680_v21 }
 0x3a4   : > { %v1714_v13 = vunpack.c.l.b16 %v1696_v25 }
 0x3a7   : > { %v1641_v29 = vpop.xlane.xlu1 %1640 }
 0x3bf   : > { %v1762_v24 = vpop.f32.mrf.mxu1 }
 0x3c3   : > { %v1617_v26 = vpop.xlane.xlu2 %1616 }
 0x3c4   : > { %3618 = vrcp.f32 %v1617_v26 }
 0x3c7   : > { %v1764_v50 = vpop.f32.mrf.mxu1 }
 0x3c8   : > { %v3524_v22 = vpack.i.bf16 %v1764_v50, %v1762_v24 }
 0x3ca   : > { %v3619_v0 = vpop.eup %3618  ;;  %3525 = vrot.lane.b32.xlu0 %v3524_v22, %s4087_s18 }
 0x3cb   : > { %v1679_v31 = vmul.f32 %v3619_v0, %v4696_v52  ;;  %v1644_v45 = vpop.xlane.xlu2 %1643 }
 0x3cc   : > { %3620 = vrcp.f32 %v1644_v45 }
 0x3cd   : > { %v1695_v32 = vpack.c.bf16 %v1679_v31, %v1679_v31  ;;  %3622 = vrcp.f32 %v1641_v29 }
 0x3cf   : > { %v1713_v61 = vunpack.c.l.b16 %v1695_v32 }
 0x3d1   : > { %v1715_v30 = vpack.c.b16 %v1714_v13, %v1713_v61 }
 0x3d2   : > { %v3621_v33 = vpop.eup %3620 }
 0x3d3   : > { %3060 = vmatmul.msk.bf16.vlgmr.msrb.gmra.mxu0 %vm1518_vm1, %v1715_v30  ;;  %v3623_v12 = vpop.eup %3622  ;;  %v1688_v42 = vmul.f32 %v3621_v33, %v4703_v57 }
 0x3d4   : > { %v1687_v15 = vmul.f32 %v3623_v12, %v4685_v35  ;;  %2067 = vmatpush.bf16.msrb.mxu0 %v3267_v49 }
 0x3d5   : > { %v1704_v62 = vpack.c.bf16 %v1688_v42, %v1688_v42 }
 0x3d6   : > { %v1703_v37 = vpack.c.bf16 %v1687_v15, %v1687_v15 }
 0x3d7   : > { %v1826_v46 = vunpack.c.l.b16 %v1704_v62  ;;  %v3554_v62 = vld [vmem:[%s699_s21] ss:$0 sm:$0xff] }
 0x3d8   : > { %v1825_v2 = vunpack.c.l.b16 %v1703_v37  ;;  %2068 = vmatpush.bf16.msrb.mxu0 %v3266_v11 }
 0x3da   : > { %v1827_v6 = vpack.c.b16 %v1826_v46, %v1825_v2  ;;  %v3642_v2 = vld [vmem:[#allocation2 + $0x10] sm:$0xff] }
 0x3dc   : > { %2069 = vmatpush.bf16.msrb.mxu0 %v3265_v54 }
 0x3df   : > { %v1790_v52 = vpop.f32.mrf.mxu2 }
 0x3e0   : > { %2070 = vmatpush.bf16.msrb.mxu0 %v3264_v23 }
 0x3e3   : > { %3064 = vmatmul.msk.bf16.vlgmr.msra.gmra.mxu0 %vm1518_vm1, %v1827_v6 }
 0x3e4   : > { %2071 = vmatpush.bf16.msrb.mxu0 %v3263_v17 }
 0x3e7   : > { %v1792_v38 = vpop.f32.mrf.mxu2 }
 0x3e8   : > { %v3529_v27 = vpack.i.bf16 %v1792_v38, %v1790_v52  ;;  %2072 = vmatpush.bf16.msrb.mxu0 %v3262_v56 }
 0x3ea   : > { %3530 = vrot.lane.b32.xlu1 %v3529_v27, %s4088_s15  ;;  %v3643_v27 = vld [vmem:[#allocation2] sm:$0xff] }
 0x3ec   : > { %2073 = vmatpush.bf16.msrb.mxu0 %v3261_v20 }
 0x3ef   : > { %v1818_v39 = vpop.f32.mrf.mxu3 }
 0x3f0   : > { %2074 = vmatpush.bf16.msrb.mxu0 %v3260_v53 }
 0x3f6   : > { %v1874_v34 = vpop.f32.mrf.mxu1 }
 0x3f7   : > { %v1820_v1 = vpop.f32.mrf.mxu3 }
 0x3f8   : > { %v3534_v57 = vpack.i.bf16 %v1820_v1, %v1818_v39 }
 0x3fa   : > { %3535 = vrot.lane.b32.xlu2 %v3534_v57, %s4089_s16  ;;  %v3644_v57 = vld [vmem:[#allocation2 + $0x18] sm:$0xff] }
 0x3fe   : > { %v1876_v35 = vpop.f32.mrf.mxu1 }
 0x3ff   : > { %v3539_v28 = vpack.i.bf16 %v1876_v35, %v1874_v34 }
 0x401   : > { %3540 = vrot.lane.b32.xlu0 %v3539_v28, %s4087_s18 }
 0x40b   : > { %v1930_v44 = vpop.f32.mrf.mxu3 }
 0x413   : > { %v1932_v41 = vpop.f32.mrf.mxu3 }
 0x414   : > { %v3549_v40 = vpack.i.bf16 %v1932_v41, %v1930_v44  ;;  %v3645_v41 = vld [vmem:[#allocation2 + $0x8] sm:$0xff] }
 0x416   : > { %3550 = vrot.lane.b32.xlu0 %v3549_v40, %s4089_s16 }
 0x419   : > { %v1902_v48 = vpop.f32.mrf.mxu2 }
 0x421   : > { %v1904_v51 = vpop.f32.mrf.mxu2 }
 0x422   : > { %v3544_v19 = vpack.i.bf16 %v1904_v51, %v1902_v48  ;;  %v4090_v48 = vmov 128.0  }
 0x423   : > { %3624 = vrcp.f32 %v4090_v48  ;;  %v3102_v48 = vld [vmem:[%s4392_s20] sm:$0xf] }
 0x424   : > { %3545 = vrot.lane.b32.xlu1 %v3544_v19, %s4088_s15 }
 0x429   : > { %v3625_v49 = vpop.eup %3624 }
 0x42a   : > { %v2101_v11 = vmul.f32 128.0, %v3625_v49  ;;  %vm2105_vm4 = vweird.f32 %v3625_v49 }
 0x42c   : > { %v2102_v51 = vsub.f32 1.0, %v2101_v11 }
 0x42e   : > { %v2103_v19 = vmul.f32 %v3625_v49, %v2102_v51 }
 0x430   : > { %v2104_v54 = vadd.f32 %v3625_v49, %v2103_v19  ;;  %v3268_v19 = vld [vmem:[%s4392_s20 + $0x4] sm:$0xf] }
 0x432   : > { %v4756_v23 = vsel %vm2105_vm4, %v3625_v49, %v2104_v54  ;;  %v3269_v49 = vld [vmem:[%s4392_s20 + $0x4] sm:$0xf0]  ;;  %v3104_v54 = vld [vmem:[%s4392_s20 + $0x8] sm:$0xf0] }
 0x43c   : > { %v3526_v5 = vpop.permute.xlu0 %3525 }
 0x43d   : > { %v3528_v55 = vunpack.i.h.bf16 %v3526_v5  ;;  %v3527_v60 = vunpack.i.l.bf16 %v3526_v5 }
 0x450   : > { %v1734_v14 = vpop.f32.mrf.mxu0 }
 0x451   : > { %v1959_v7 = vsel %vm1271_vm0, %v1734_v14, %v3527_v60 }
 0x454   : > { %v3536_v58 = vpop.permute.xlu2 %3535 }
 0x455   : > { %v3538_v43 = vunpack.i.h.bf16 %v3536_v58  ;;  %v3537_v8 = vunpack.i.l.bf16 %v3536_v58 }
 0x458   : > { %v1736_v59 = vpop.f32.mrf.mxu0 }
 0x459   : > { %v1960_v9 = vsel %vm1271_vm0, %v1736_v59, %v3528_v55 }
 0x45c   : > { %v3531_v4 = vpop.permute.xlu1 %3530 }
 0x45d   : > { %v3533_v63 = vunpack.i.h.bf16 %v3531_v4  ;;  %v3532_v3 = vunpack.i.l.bf16 %v3531_v4 }
 0x45f   : > { %v1962_v36 = vsel %vm1961_vm2, %v1959_v7, %v3532_v3  ;;  %v1963_v10 = vsel %vm1961_vm2, %v1960_v9, %v3533_v63  ;;  %v3158_v9 = vld [vmem:[%s4392_s20 + $0x70] sm:$0xf] }
 0x460   : > { %v1965_v47 = vsel %vm1964_vm3, %v1962_v36, %v3537_v8  ;;  %v1966_v18 = vsel %vm1964_vm3, %v1963_v10, %v3538_v43  ;;  %v1846_v26 = vpop.f32.mrf.mxu0  ;;  %v3283_v36 = vld [vmem:[%s4392_s20 + $0x74] sm:$0xf0]  ;;  %v3282_v10 = vld [vmem:[%s4392_s20 + $0x74] sm:$0xf] }
 0x461   : > { %v1997_v24 = vpack.c.bf16 %v1966_v18, %v1965_v47  ;;  %v3159_v47 = vor.u32 %v3283_v36, %v3158_v9  ;;  %v3160_v18 = vld [vmem:[%s4392_s20 + $0x78] sm:$0xf0] }
 0x463   : > { %2075 = vmatmul.bf16.vlgmr.msrb.gmra.mxu0 %v1997_v24  ;;  %v3163_v24 = vor.u32 %v3282_v10, %v3160_v18  ;;  %2297 = vmatpush.bf16.msrb.mxu1 %v3159_v47 }
 0x465   : > { %2316 = vmatpush.bf16.msra.mxu2 %v3163_v24 }
 0x468   : > { %v1848_v25 = vpop.f32.mrf.mxu0 }
 0x473   : > { %v3541_v16 = vpop.permute.xlu0 %3540 }
 0x474   : > { %v3543_v21 = vunpack.i.h.bf16 %v3541_v16  ;;  %v3542_v50 = vunpack.i.l.bf16 %v3541_v16  ;;  %v3281_v16 = vld [vmem:[%s4392_s20 + $0x64] sm:$0xf0] }
 0x476   : > { %v1991_v45 = vsel %vm1271_vm0, %v1846_v26, %v3542_v50  ;;  %v1992_v32 = vsel %vm1271_vm0, %v1848_v25, %v3543_v21  ;;  %v3150_v26 = vld [vmem:[%s4392_s20 + $0x60] sm:$0xf]  ;;  %v3280_v21 = vld [vmem:[%s4392_s20 + $0x64] sm:$0xf]  ;;  %v3142_v25 = vld [vmem:[%s4392_s20 + $0x50] sm:$0xf] }
 0x477   : > { %v3151_v50 = vor.u32 %v3281_v16, %v3150_v26 }
 0x479   : > { %2298 = vmatpush.bf16.msrb.mxu1 %v3151_v50 }
 0x488   : > { %v3551_v22 = vpop.permute.xlu0 %3550 }
 0x489   : > { %v3553_v13 = vunpack.i.h.bf16 %v3551_v22  ;;  %v3552_v61 = vunpack.i.l.bf16 %v3551_v22  ;;  %v3152_v22 = vld [vmem:[%s4392_s20 + $0x68] sm:$0xf0] }
 0x496   : > { %v3546_v0 = vpop.permute.xlu1 %3545 }
 0x497   : > { %v3548_v29 = vunpack.i.h.bf16 %v3546_v0  ;;  %v3547_v31 = vunpack.i.l.bf16 %v3546_v0  ;;  %v3155_v0 = vor.u32 %v3280_v21, %v3152_v22  ;;  %v3555_v21 = vld [vmem:[%s708_s27] ss:$0 sm:$0xff] }
 0x499   : > { %v1993_v30 = vsel %vm1961_vm2, %v1991_v45, %v3547_v31  ;;  %v1994_v33 = vsel %vm1961_vm2, %v1992_v32, %v3548_v29  ;;  %2317 = vmatpush.bf16.msra.mxu2 %v3155_v0  ;;  %v3279_v29 = vld [vmem:[%s4392_s20 + $0x54] sm:$0xf0]  ;;  %v3278_v31 = vld [vmem:[%s4392_s20 + $0x54] sm:$0xf]  ;;  %v3144_v32 = vld [vmem:[%s4392_s20 + $0x58] sm:$0xf0] }
 0x49a   : > { %v1995_v12 = vsel %vm1964_vm3, %v1993_v30, %v3552_v61  ;;  %v1996_v42 = vsel %vm1964_vm3, %v1994_v33, %v3553_v13  ;;  %v3143_v45 = vor.u32 %v3279_v29, %v3142_v25  ;;  %v3147_v13 = vor.u32 %v3278_v31, %v3144_v32  ;;  %v3134_v61 = vld [vmem:[%s4392_s20 + $0x40] sm:$0xf]  ;;  %v3277_v30 = vld [vmem:[%s4392_s20 + $0x44] sm:$0xf0]  ;;  %v3276_v33 = vld [vmem:[%s4392_s20 + $0x44] sm:$0xf] }
 0x49b   : > { %v1998_v15 = vpack.c.bf16 %v1996_v42, %v1995_v12  ;;  %v3135_v12 = vor.u32 %v3277_v30, %v3134_v61  ;;  %v3136_v42 = vld [vmem:[%s4392_s20 + $0x48] sm:$0xf0]  ;;  %v3556_v29 = vld [vmem:[%s717_s12] ss:$0 sm:$0xff]  ;;  %v3291_v30 = vld [vmem:[%s4398_s19 + $0x38] sm:$0xff]  ;;  %s4966_s12 = scalar_lea.vmem [#allocation18], %s4361_s3 }
 0x49c   : > { %2299 = vmatpush.bf16.msrb.mxu1 %v3143_v45  ;;  %2479 = vmatpush.bf16.msrb.mxu3 %v3291_v30  ;;  %s4967_s3 = sld [smem:[#allocation30_spill]] }
 0x49d   : > { %2080 = vmatmul.bf16.gmra.mxu0 %v1998_v15  ;;  %2318 = vmatpush.bf16.msra.mxu2 %v3147_v13  ;;  %v3139_v15 = vor.u32 %v3276_v33, %v3136_v42  ;;  %v3299_v33 = vld [vmem:[%s4398_s19 + $0x78] sm:$0xff] }
 0x49e   : > { %2498 = vmatpush.bf16.msra.mxu0 %v3299_v33 }
 0x4a0   : > { %2300 = vmatpush.bf16.msrb.mxu1 %v3135_v12 }
 0x4a1   : > { %2319 = vmatpush.bf16.msra.mxu2 %v3139_v15  ;;  %v3290_v15 = vld [vmem:[%s4398_s19 + $0x30] sm:$0xff] }
 0x4a2   : > { %2480 = vmatpush.bf16.msrb.mxu3 %v3290_v15  ;;  %p3228_p3 = scmp.ne.s32.totalorder %s4967_s3, 2 }
 0x4e0   : > { %v2076_v37 = vpop.f32.mrf.mxu0 }
 0x4e1   : > { %v2077_v46 = vadd.f32 %v3554_v62, %v2076_v37  ;;  %v3275_v37 = vld [vmem:[%s4392_s20 + $0x34] sm:$0xf0] }
 0x4e3   : > { %v2086_v52 = vadd.f32 %v3642_v2, %v2077_v46  ;;  %v3274_v46 = vld [vmem:[%s4392_s20 + $0x34] sm:$0xf] }
 0x4e5   : > { %2092 = vadd.xlane.f32.xlu2 %v2086_v52 }
 0x4e8   : > { %v2078_v6 = vpop.f32.mrf.mxu0 }
 0x4e9   : > { %v2079_v38 = vadd.f32 %v3554_v62, %v2078_v6 }
 0x4eb   : > { %v2087_v39 = vadd.f32 %v3643_v27, %v2079_v38  ;;  %v3118_v38 = vld [vmem:[%s4392_s20 + $0x20] sm:$0xf]  ;;  %v3273_v27 = vld [vmem:[%s4392_s20 + $0x24] sm:$0xf0] }
 0x4ed   : > { %2094 = vadd.xlane.f32.xlu1 %v2087_v39 }
 0x51a   : > { %v2081_v34 = vpop.f32.mrf.mxu0 }
 0x51b   : > { %v2082_v1 = vadd.f32 %v3554_v62, %v2081_v34  ;;  %v3119_v34 = vor.u32 %v3273_v27, %v3118_v38 }
 0x51d   : > { %v2088_v35 = vadd.f32 %v3644_v57, %v2082_v1  ;;  %v3120_v1 = vld [vmem:[%s4392_s20 + $0x28] sm:$0xf0] }
 0x51f   : > { %2096 = vadd.xlane.f32.xlu0 %v2088_v35 }
 0x522   : > { %v2083_v28 = vpop.f32.mrf.mxu0 }
 0x523   : > { %v2084_v44 = vadd.f32 %v3554_v62, %v2083_v28  ;;  %v3126_v62 = vld [vmem:[%s4392_s20 + $0x30] sm:$0xf]  ;;  %v3271_v28 = vld [vmem:[%s4392_s20 + $0x14] sm:$0xf0] }
 0x524   : > { %v3127_v2 = vor.u32 %v3275_v37, %v3126_v62  ;;  %v3298_v62 = vld [vmem:[%s4398_s19 + $0x70] sm:$0xff] }
 0x525   : > { %v2089_v40 = vadd.f32 %v3645_v41, %v2084_v44  ;;  %v3270_v44 = vld [vmem:[%s4392_s20 + $0x14] sm:$0xf]  ;;  %2499 = vmatpush.bf16.msra.mxu0 %v3298_v62 }
 0x526   : > { %2301 = vmatpush.bf16.msrb.mxu1 %v3127_v2 }
 0x527   : > { %2098 = vadd.xlane.f32.xlu2 %v2089_v40 }
 0x52a   : > { %2302 = vmatpush.bf16.msrb.mxu1 %v3119_v34 }
 0x558   : > { %v2093_v17 = vpop.xlane.xlu2 %2092 }
 0x559   : > { %v2107_v56 = vmul.f32 %v4756_v23, %v2093_v17 }
 0x55b   : > { %v4759_v20 = vsub.f32 %v2086_v52, %v2107_v56  ;;  %v3128_v52 = vld [vmem:[%s4392_s20 + $0x38] sm:$0xf0]  ;;  %v3103_v56 = vor.u32 %v3269_v49, %v3102_v48 }
 0x55c   : > { %v3131_v6 = vor.u32 %v3274_v46, %v3128_v52  ;;  %v3289_v52 = vld [vmem:[%s4398_s19 + $0x28] sm:$0xff] }
 0x55d   : > { %v2115_v53 = vmul.f32 %v4759_v20, %v4759_v20  ;;  %2481 = vmatpush.bf16.msrb.mxu3 %v3289_v52 }
 0x55e   : > { %2320 = vmatpush.bf16.msra.mxu2 %v3131_v6  ;;  %v3297_v6 = vld [vmem:[%s4398_s19 + $0x68] sm:$0xff] }
 0x55f   : > { %2119 = vadd.xlane.f32.xlu1 %v2115_v53  ;;  %v3107_v53 = vor.u32 %v3268_v19, %v3104_v54  ;;  %2500 = vmatpush.bf16.msra.mxu0 %v3297_v6  ;;  %v3557_v6 = vld [vmem:[%s848_s8] ss:$0 sm:$0xff] }
 0x560   : > { %v2095_v14 = vpop.xlane.xlu1 %2094 }
 0x561   : > { %v2108_v5 = vmul.f32 %v4756_v23, %v2095_v14 }
 0x563   : > { %v4764_v58 = vsub.f32 %v2087_v39, %v2108_v5  ;;  %v3272_v39 = vld [vmem:[%s4392_s20 + $0x24] sm:$0xf] }
 0x564   : > { %v3123_v57 = vor.u32 %v3272_v39, %v3120_v1  ;;  %v3288_v39 = vld [vmem:[%s4398_s19 + $0x20] sm:$0xff] }
 0x565   : > { %v2116_v59 = vmul.f32 %v4764_v58, %v4764_v58  ;;  %2482 = vmatpush.bf16.msrb.mxu3 %v3288_v39 }
 0x566   : > { %2321 = vmatpush.bf16.msra.mxu2 %v3123_v57 }
 0x567   : > { %2121 = vadd.xlane.f32.xlu0 %v2116_v59 }
 0x592   : > { %v2097_v55 = vpop.xlane.xlu0 %2096 }
 0x593   : > { %v2109_v60 = vmul.f32 %v4756_v23, %v2097_v55 }
 0x595   : > { %v4769_v4 = vsub.f32 %v2088_v35, %v2109_v60  ;;  %v3110_v35 = vld [vmem:[%s4392_s20 + $0x10] sm:$0xf] }
 0x596   : > { %v3111_v41 = vor.u32 %v3271_v28, %v3110_v35 }
 0x597   : > { %v2117_v63 = vmul.f32 %v4769_v4, %v4769_v4 }
 0x598   : > { %2303 = vmatpush.bf16.msrb.mxu1 %v3111_v41 }
 0x599   : > { %2123 = vadd.xlane.f32.xlu2 %v2117_v63 }
 0x59a   : > { %v2099_v3 = vpop.xlane.xlu2 %2098 }
 0x59b   : > { %v2110_v7 = vmul.f32 %v4756_v23, %v2099_v3 }
 0x59c   : > { %2304 = vmatpush.bf16.msrb.mxu1 %v3103_v56 }
 0x59d   : > { %v4774_v43 = vsub.f32 %v2089_v40, %v2110_v7  ;;  %v3112_v40 = vld [vmem:[%s4392_s20 + $0x18] sm:$0xf0] }
 0x59e   : > { %v3115_v51 = vor.u32 %v3270_v44, %v3112_v40 }
 0x59f   : > { %v2118_v8 = vmul.f32 %v4774_v43, %v4774_v43 }
 0x5a0   : > { %2322 = vmatpush.bf16.msra.mxu2 %v3115_v51 }
 0x5a1   : > { %2125 = vadd.xlane.f32.xlu1 %v2118_v8 }
 0x5a4   : > { %2323 = vmatpush.bf16.msra.mxu2 %v3107_v53  ;;  %v3287_v53 = vld [vmem:[%s4398_s19 + $0x18] sm:$0xff] }
 0x5a5   : > { %2483 = vmatpush.bf16.msrb.mxu3 %v3287_v53 }
 0x5d2   : > { %v2120_v11 = vpop.xlane.xlu1 %2119 }
 0x5d3   : > { %v2127_v17 = vmul.f32 %v2120_v11, %v4756_v23 }
 0x5d5   : > { %v2131_v14 = vadd.f32 1e-05, %v2127_v17 }
 0x5d7   : > { %3626 = vrsqrt.f32 %v2131_v14  ;;  %vm2141_vm6 = vweird.f32 %v2131_v14 }
 0x5da   : > { %v2122_v5 = vpop.xlane.xlu0 %2121 }
 0x5db   : > { %v2128_v59 = vmul.f32 %v2122_v5, %v4756_v23  ;;  %v3295_v5 = vld [vmem:[%s4398_s19 + $0x58] sm:$0xff] }
 0x5dd   : > { %v3627_v55 = vpop.eup %3626  ;;  %v2132_v60 = vadd.f32 1e-05, %v2128_v59  ;;  %v3285_v59 = vld [vmem:[%s4398_s19 + $0x8] sm:$0xff] }
 0x5de   : > { %v2136_v63 = vmul.f32 %v3627_v55, %v2131_v14  ;;  %vm2142_vm5 = vweird.f32 %v3627_v55  ;;  %v3296_v14 = vld [vmem:[%s4398_s19 + $0x60] sm:$0xff] }
 0x5df   : > { %3628 = vrsqrt.f32 %v2132_v60  ;;  %vm2143_vm7 = vmor %vm2141_vm6, %vm2142_vm5  ;;  %vm2151_vm9 = vweird.f32 %v2132_v60  ;;  %2501 = vmatpush.bf16.msra.mxu0 %v3296_v14 }
 0x5e0   : > { %v2137_v3 = vmul.f32 %v3627_v55, %v2136_v63  ;;  %v3293_v63 = vld [vmem:[%s4398_s19 + $0x48] sm:$0xff] }
 0x5e2   : > { %v2138_v7 = vmul.f32 0.5, %v2137_v3  ;;  %v3292_v3 = vld [vmem:[%s4398_s19 + $0x40] sm:$0xff] }
 0x5e3   : > { %2502 = vmatpush.bf16.msra.mxu0 %v3295_v5 }
 0x5e4   : > { %v2139_v8 = vsub.f32 1.5, %v2138_v7  ;;  %v2211_v7 = vld [vmem:[%s4418_s22] sm:$0x3] }
 0x5e5   : > { %v3629_v9 = vpop.eup %3628 }
 0x5e6   : > { %v2140_v36 = vmul.f32 %v3627_v55, %v2139_v8  ;;  %v2146_v10 = vmul.f32 %v3629_v9, %v2132_v60  ;;  %vm2152_vm8 = vweird.f32 %v3629_v9  ;;  %v3284_v60 = vld [vmem:[%s4398_s19] sm:$0xff] }
 0x5e7   : > { %vm2153_vm10 = vmor %vm2151_vm9, %vm2152_vm8 }
 0x5e8   : > { %v2147_v47 = vmul.f32 %v3629_v9, %v2146_v10  ;;  %v2144_v18 = vsel %vm2143_vm7, %v3627_v55, %v2140_v36  ;;  %v3294_v55 = vld [vmem:[%s4398_s19 + $0x50] sm:$0xff] }
 0x5e9   : > { %v2175_v16 = vmul.f32 %v2144_v18, %v4759_v20  ;;  %2503 = vmatpush.bf16.msra.mxu0 %v3294_v55  ;;  %v2214_v18 = vperm.slane %v2211_v7, 1 }
 0x5ea   : > { %v2148_v24 = vmul.f32 0.5, %v2147_v47 }
 0x5eb   : > { %v2182_v25 = vmul.f32 %v3555_v21, %v2175_v16 }
 0x5ec   : > { %v2149_v26 = vsub.f32 1.5, %v2148_v24 }
 0x5ed   : > { %v4818_v45 = vadd.f32 %v3556_v29, %v2182_v25  ;;  %2504 = vmatpush.bf16.msra.mxu0 %v3293_v63 }
 0x5ee   : > { %v2150_v50 = vmul.f32 %v3629_v9, %v2149_v26 }
 0x5f0   : > { %v2154_v22 = vsel %vm2153_vm10, %v3629_v9, %v2150_v50  ;;  %v2213_v9 = vperm.slane %v2211_v7, 0 }
 0x5f1   : > { %v2176_v0 = vmul.f32 %v2154_v22, %v4764_v58  ;;  %2505 = vmatpush.bf16.msra.mxu0 %v3292_v3 }
 0x5f3   : > { %v2183_v31 = vmul.f32 %v3555_v21, %v2176_v0 }
 0x5f5   : > { %v4820_v32 = vadd.f32 %v3556_v29, %v2183_v31 }
 0x5f7   : > { %v2193_v20 = vpack.c.bf16 %v4820_v32, %v4818_v45 }
 0x5f9   : > { %2305 = vmatmul.bf16.vlgmr.msrb.gmra.mxu1 %v2193_v20  ;;  %2324 = vmatmul.bf16.vlgmr.msra.gmra.mxu2 %v2193_v20 }
 0x60c   : > { %v2124_v13 = vpop.xlane.xlu2 %2123 }
 0x60d   : > { %v2129_v61 = vmul.f32 %v2124_v13, %v4756_v23 }
 0x60f   : > { %v2133_v58 = vadd.f32 1e-05, %v2129_v61 }
 0x611   : > { %3630 = vrsqrt.f32 %v2133_v58  ;;  %vm2161_vm12 = vweird.f32 %v2133_v58 }
 0x614   : > { %v2126_v12 = vpop.xlane.xlu1 %2125 }
 0x615   : > { %v2130_v42 = vmul.f32 %v2126_v12, %v4756_v23 }
 0x617   : > { %v3631_v37 = vpop.eup %3630  ;;  %v2134_v46 = vadd.f32 1e-05, %v2130_v42 }
 0x618   : > { %v2156_v2 = vmul.f32 %v3631_v37, %v2133_v58  ;;  %vm2162_vm11 = vweird.f32 %v3631_v37 }
 0x619   : > { %3632 = vrsqrt.f32 %v2134_v46  ;;  %vm2163_vm13 = vmor %vm2161_vm12, %vm2162_vm11  ;;  %vm2171_vm15 = vweird.f32 %v2134_v46 }
 0x61a   : > { %v2157_v38 = vmul.f32 %v3631_v37, %v2156_v2 }
 0x61c   : > { %v2158_v27 = vmul.f32 0.5, %v2157_v38 }
 0x61e   : > { %v2159_v34 = vsub.f32 1.5, %v2158_v27 }
 0x61f   : > { %v3633_v1 = vpop.eup %3632 }
 0x620   : > { %v2160_v57 = vmul.f32 %v3631_v37, %v2159_v34  ;;  %v2166_v35 = vmul.f32 %v3633_v1, %v2134_v46  ;;  %vm2172_vm14 = vweird.f32 %v3633_v1 }
 0x621   : > { %vm2173_vm0 = vmor %vm2171_vm15, %vm2172_vm14 }
 0x622   : > { %v2167_v28 = vmul.f32 %v3633_v1, %v2166_v35  ;;  %v2164_v41 = vsel %vm2163_vm13, %v3631_v37, %v2160_v57 }
 0x623   : > { %v2177_v48 = vmul.f32 %v2164_v41, %v4769_v4 }
 0x624   : > { %v2168_v44 = vmul.f32 0.5, %v2167_v28 }
 0x625   : > { %v2184_v19 = vmul.f32 %v3555_v21, %v2177_v48 }
 0x626   : > { %v2169_v40 = vsub.f32 1.5, %v2168_v44 }
 0x627   : > { %v4835_v17 = vadd.f32 %v3556_v29, %v2184_v19 }
 0x628   : > { %v2170_v49 = vmul.f32 %v3633_v1, %v2169_v40 }
 0x62a   : > { %v2174_v11 = vsel %vm2173_vm0, %v3633_v1, %v2170_v49 }
 0x62b   : > { %v2178_v51 = vmul.f32 %v2174_v11, %v4774_v43  ;;  %v3286_v43 = vld [vmem:[%s4398_s19 + $0x10] sm:$0xff] }
 0x62c   : > { %2484 = vmatpush.bf16.msrb.mxu3 %v3286_v43 }
 0x62d   : > { %v2185_v54 = vmul.f32 %v3555_v21, %v2178_v51 }
 0x62f   : > { %v4837_v56 = vadd.f32 %v3556_v29, %v2185_v54 }
 0x630   : > { %2485 = vmatpush.bf16.msrb.mxu3 %v3285_v59 }
 0x631   : > { %v2194_v4 = vpack.c.bf16 %v4837_v56, %v4835_v17 }
 0x633   : > { %2310 = vmatmul.bf16.gmra.mxu1 %v2194_v4  ;;  %2329 = vmatmul.bf16.gmra.mxu2 %v2194_v4 }
 0x634   : > { %2486 = vmatpush.bf16.msrb.mxu3 %v3284_v60 }
 0x676   : > { %v2306_v8 = vpop.f32.mrf.mxu1 }
 0x677   : > { %v2307_v10 = vadd.f32 %v2306_v8, %v2213_v9 }
 0x679   : > { %v2335_v26 = vmax.f32 %v2307_v10, 0.0 }
 0x67c   : > { %v2325_v36 = vpop.f32.mrf.mxu2 }
 0x67d   : > { %v2326_v21 = vadd.f32 %v2325_v36, %v2214_v18 }
 0x67e   : > { %v2308_v47 = vpop.f32.mrf.mxu1 }
 0x67f   : > { %v2309_v24 = vadd.f32 %v2308_v47, %v2213_v9  ;;  %v2336_v25 = vmax.f32 %v2326_v21, 0.0 }
 0x681   : > { %v2337_v16 = vmax.f32 %v2309_v24, 0.0 }
 0x683   : > { %v2343_v50 = vpack.c.bf16 %v2337_v16, %v2335_v26 }
 0x684   : > { %v2327_v22 = vpop.f32.mrf.mxu2 }
 0x685   : > { %v2328_v0 = vadd.f32 %v2327_v22, %v2214_v18  ;;  %2487 = vmatmul.bf16.vlgmr.msrb.gmra.mxu3 %v2343_v50 }
 0x687   : > { %v2338_v29 = vmax.f32 %v2328_v0, 0.0 }
 0x689   : > { %v2344_v31 = vpack.c.bf16 %v2338_v29, %v2336_v25 }
 0x68b   : > { %2506 = vmatmul.bf16.vlgmr.msra.gmra.mxu0 %v2344_v31 }
 0x6b0   : > { %v2311_v20 = vpop.f32.mrf.mxu1 }
 0x6b1   : > { %v2312_v61 = vadd.f32 %v2311_v20, %v2213_v9 }
 0x6b3   : > { %v2339_v33 = vmax.f32 %v2312_v61, 0.0  ;;  %v3558_v61 = vld [vmem:[%s4966_s12] ss:$0 sm:$0xff] }
 0x6b6   : > { %v2330_v13 = vpop.f32.mrf.mxu2 }
 0x6b7   : > { %v2331_v42 = vadd.f32 %v2330_v13, %v2214_v18 }
 0x6b8   : > { %v2313_v58 = vpop.f32.mrf.mxu1 }
 0x6b9   : > { %v2314_v30 = vadd.f32 %v2313_v58, %v2213_v9  ;;  %v2340_v46 = vmax.f32 %v2331_v42, 0.0 }
 0x6bb   : > { %v2341_v12 = vmax.f32 %v2314_v30, 0.0 }
 0x6bd   : > { %v2345_v15 = vpack.c.bf16 %v2341_v12, %v2339_v33  ;;  %v3559_v33 = vld [vmem:[%s755_s28] ss:$0 sm:$0xff] }
 0x6be   : > { %v2332_v62 = vpop.f32.mrf.mxu2 }
 0x6bf   : > { %v2333_v37 = vadd.f32 %v2332_v62, %v2214_v18  ;;  %2492 = vmatmul.bf16.gmra.mxu3 %v2345_v15 }
 0x6c1   : > { %v2342_v2 = vmax.f32 %v2333_v37, 0.0 }
 0x6c3   : > { %v2346_v52 = vpack.c.bf16 %v2342_v2, %v2340_v46 }
 0x6c5   : > { %2511 = vmatmul.bf16.gmra.mxu0 %v2346_v52 }
 0x708   : > { %v2488_v38 = vpop.f32.mrf.mxu3  ;;  %v2507_v27 = vpop.f32.mrf.mxu0 }
 0x709   : > { %v2489_v39 = vadd.f32 %v3557_v6, %v2488_v38 }
 0x70b   : > { %v2508_v34 = vadd.f32 %v2507_v27, %v2489_v39 }
 0x70d   : > { %v2517_v1 = vadd.f32 %v2508_v34, %v4818_v45 }
 0x70f   : > { %2523 = vadd.xlane.f32.xlu0 %v2517_v1 }
 0x710   : > { %v2490_v57 = vpop.f32.mrf.mxu3  ;;  %v2509_v28 = vpop.f32.mrf.mxu0 }
 0x711   : > { %v2491_v35 = vadd.f32 %v3557_v6, %v2490_v57 }
 0x713   : > { %v2510_v44 = vadd.f32 %v2509_v28, %v2491_v35 }
 0x715   : > { %v2518_v41 = vadd.f32 %v2510_v44, %v4820_v32 }
 0x717   : > { %2525 = vadd.xlane.f32.xlu2 %v2518_v41 }
 0x742   : > { %v2493_v40 = vpop.f32.mrf.mxu3  ;;  %v2512_v48 = vpop.f32.mrf.mxu0 }
 0x743   : > { %v2494_v49 = vadd.f32 %v3557_v6, %v2493_v40 }
 0x745   : > { %v2513_v11 = vadd.f32 %v2512_v48, %v2494_v49 }
 0x747   : > { %v2519_v51 = vadd.f32 %v2513_v11, %v4835_v17 }
 0x749   : > { %2527 = vadd.xlane.f32.xlu1 %v2519_v51 }
 0x74a   : > { %v2495_v19 = vpop.f32.mrf.mxu3  ;;  %v2514_v4 = vpop.f32.mrf.mxu0 }
 0x74b   : > { %v2496_v54 = vadd.f32 %v3557_v6, %v2495_v19 }
 0x74d   : > { %v2515_v53 = vadd.f32 %v2514_v4, %v2496_v54 }
 0x74f   : > { %v2520_v45 = vadd.f32 %v2515_v53, %v4837_v56 }
 0x751   : > { %2529 = vadd.xlane.f32.xlu0 %v2520_v45 }
 0x782   : > { %v2524_v14 = vpop.xlane.xlu0 %2523 }
 0x783   : > { %v2531_v43 = vmul.f32 %v2524_v14, %v4756_v23 }
 0x785   : > { %v2535_v5 = vsub.f32 %v2517_v1, %v2531_v43 }
 0x787   : > { %v2539_v32 = vmul.f32 %v2535_v5, %v2535_v5 }
 0x789   : > { %2543 = vadd.xlane.f32.xlu2 %v2539_v32 }
 0x78a   : > { %v2526_v59 = vpop.xlane.xlu2 %2525 }
 0x78b   : > { %v2532_v55 = vmul.f32 %v2526_v59, %v4756_v23 }
 0x78d   : > { %v2536_v60 = vsub.f32 %v2518_v41, %v2532_v55 }
 0x78f   : > { %v2540_v63 = vmul.f32 %v2536_v60, %v2536_v60 }
 0x791   : > { %2545 = vadd.xlane.f32.xlu1 %v2540_v63 }
 0x7bc   : > { %v2528_v17 = vpop.xlane.xlu1 %2527 }
 0x7bd   : > { %v2533_v3 = vmul.f32 %v2528_v17, %v4756_v23 }
 0x7bf   : > { %v4863_v7 = vsub.f32 %v2519_v51, %v2533_v3 }
 0x7c1   : > { %v2541_v56 = vmul.f32 %v4863_v7, %v4863_v7 }
 0x7c3   : > { %2547 = vadd.xlane.f32.xlu0 %v2541_v56 }
 0x7c4   : > { %v2530_v8 = vpop.xlane.xlu0 %2529 }
 0x7c5   : > { %v2534_v9 = vmul.f32 %v2530_v8, %v4756_v23 }
 0x7c7   : > { %v4868_v36 = vsub.f32 %v2520_v45, %v2534_v9 }
 0x7c9   : > { %v2542_v10 = vmul.f32 %v4868_v36, %v4868_v36 }
 0x7cb   : > { %2549 = vadd.xlane.f32.xlu2 %v2542_v10 }
 0x7fc   : > { %v2544_v47 = vpop.xlane.xlu2 %2543 }
 0x7fd   : > { %v2551_v18 = vmul.f32 %v2544_v47, %v4756_v23 }
 0x7ff   : > { %v2555_v24 = vadd.f32 1e-05, %v2551_v18 }
 0x801   : > { %3634 = vrsqrt.f32 %v2555_v24  ;;  %vm2565_vm2 = vweird.f32 %v2555_v24 }
 0x804   : > { %v2546_v26 = vpop.xlane.xlu1 %2545 }
 0x805   : > { %v2552_v16 = vmul.f32 %v2546_v26, %v4756_v23 }
 0x807   : > { %v3635_v21 = vpop.eup %3634  ;;  %v2556_v50 = vadd.f32 1e-05, %v2552_v16 }
 0x808   : > { %v2560_v22 = vmul.f32 %v3635_v21, %v2555_v24  ;;  %vm2566_vm1 = vweird.f32 %v3635_v21 }
 0x809   : > { %3636 = vrsqrt.f32 %v2556_v50  ;;  %vm2567_vm3 = vmor %vm2565_vm2, %vm2566_vm1  ;;  %vm2575_vm5 = vweird.f32 %v2556_v50 }
 0x80a   : > { %v2561_v0 = vmul.f32 %v3635_v21, %v2560_v22 }
 0x80c   : > { %v2562_v25 = vmul.f32 0.5, %v2561_v0 }
 0x80e   : > { %v2563_v29 = vsub.f32 1.5, %v2562_v25 }
 0x80f   : > { %v3637_v31 = vpop.eup %3636 }
 0x810   : > { %v2564_v20 = vmul.f32 %v3635_v21, %v2563_v29  ;;  %v2570_v13 = vmul.f32 %v3637_v31, %v2556_v50  ;;  %vm2576_vm4 = vweird.f32 %v3637_v31 }
 0x811   : > { %vm2577_vm6 = vmor %vm2575_vm5, %vm2576_vm4 }
 0x812   : > { %v2568_v58 = vsel %vm2567_vm3, %v3635_v21, %v2564_v20  ;;  %v2571_v30 = vmul.f32 %v3637_v31, %v2570_v13 }
 0x813   : > { %v2599_v12 = vmul.f32 %v2568_v58, %v2535_v5 }
 0x814   : > { %v2572_v42 = vmul.f32 0.5, %v2571_v30 }
 0x815   : > { %v2606_v15 = vmul.f32 %v3558_v61, %v2599_v12 }
 0x816   : > { %v2573_v62 = vsub.f32 1.5, %v2572_v42 }
 0x817   : > { %v2613_v37 = vadd.f32 %v3559_v33, %v2606_v15 }
 0x818   : > { %v2574_v46 = vmul.f32 %v3637_v31, %v2573_v62 }
 0x819   : > { %2617 = vst [vmem:[#allocation2 + $0x10] sm:$0xff] %v2613_v37 }
 0x81a   : > { %v2578_v2 = vsel %vm2577_vm6, %v3637_v31, %v2574_v46 }
 0x81b   : > { %v2600_v52 = vmul.f32 %v2578_v2, %v2536_v60 }
 0x81d   : > { %v2607_v6 = vmul.f32 %v3558_v61, %v2600_v52 }
 0x81f   : > { %v2614_v38 = vadd.f32 %v3559_v33, %v2607_v6 }
 0x821   : > { %2618 = vst [vmem:[#allocation2] sm:$0xff] %v2614_v38 }
 0x836   : > { %v2548_v27 = vpop.xlane.xlu0 %2547 }
 0x837   : > { %v2553_v39 = vmul.f32 %v2548_v27, %v4756_v23 }
 0x839   : > { %v2557_v34 = vadd.f32 1e-05, %v2553_v39 }
 0x83b   : > { %3638 = vrsqrt.f32 %v2557_v34  ;;  %vm2585_vm8 = vweird.f32 %v2557_v34 }
 0x83e   : > { %v2550_v1 = vpop.xlane.xlu2 %2549 }
 0x83f   : > { %v2554_v57 = vmul.f32 %v2550_v1, %v4756_v23 }
 0x841   : > { %v3639_v35 = vpop.eup %3638  ;;  %v2558_v28 = vadd.f32 1e-05, %v2554_v57 }
 0x842   : > { %v2580_v44 = vmul.f32 %v3639_v35, %v2557_v34  ;;  %vm2586_vm7 = vweird.f32 %v3639_v35 }
 0x843   : > { %3640 = vrsqrt.f32 %v2558_v28  ;;  %vm2587_vm9 = vmor %vm2585_vm8, %vm2586_vm7  ;;  %vm2595_vm11 = vweird.f32 %v2558_v28 }
 0x844   : > { %v2581_v41 = vmul.f32 %v3639_v35, %v2580_v44 }
 0x846   : > { %v2582_v40 = vmul.f32 0.5, %v2581_v41 }
 0x848   : > { %v2583_v48 = vsub.f32 1.5, %v2582_v40 }
 0x849   : > { %v3641_v49 = vpop.eup %3640 }
 0x84a   : > { %v2584_v11 = vmul.f32 %v3639_v35, %v2583_v48  ;;  %v2590_v51 = vmul.f32 %v3641_v49, %v2558_v28  ;;  %vm2596_vm10 = vweird.f32 %v3641_v49 }
 0x84b   : > { %vm2597_vm12 = vmor %vm2595_vm11, %vm2596_vm10 }
 0x84c   : > { %v2588_v19 = vsel %vm2587_vm9, %v3639_v35, %v2584_v11  ;;  %v2591_v54 = vmul.f32 %v3641_v49, %v2590_v51 }
 0x84d   : > { %v2601_v4 = vmul.f32 %v2588_v19, %v4863_v7 }
 0x84e   : > { %v2592_v53 = vmul.f32 0.5, %v2591_v54 }
 0x84f   : > { %v2608_v45 = vmul.f32 %v3558_v61, %v2601_v4 }
 0x850   : > { %v2593_v14 = vsub.f32 1.5, %v2592_v53 }
 0x851   : > { %v2615_v43 = vadd.f32 %v3559_v33, %v2608_v45 }
 0x852   : > { %v2594_v5 = vmul.f32 %v3641_v49, %v2593_v14 }
 0x853   : > { %2619 = vst [vmem:[#allocation2 + $0x18] sm:$0xff] %v2615_v43 }
 0x854   : > { %v2598_v32 = vsel %vm2597_vm12, %v3641_v49, %v2594_v5 }
 0x855   : > { %v2602_v59 = vmul.f32 %v2598_v32, %v4868_v36 }
 0x857   : > { %v2609_v55 = vmul.f32 %v3558_v61, %v2602_v59  ;;  %2624 = sbr.rel (%p3228_p3) target bundleno = 2271 (0x8df), region = 124 }
 0x859   : > { %v2616_v60 = vadd.f32 %v3559_v33, %v2609_v55 }
 0x85b   : > { %2620 = vst [vmem:[#allocation2 + $0x8] sm:$0xff] %v2616_v60 }
 0x85c   : > { %2629 = vadd.xlane.f32.xlu1 %v2615_v43  ;;  %2625 = vadd.xlane.f32.xlu0 %v2613_v37  ;;  %v2641_v3 = vlaneseq  ;;  %vm2646_vm13 = vcmask 130112   ;;  %vm2651_vm14 = vcmask 1041409   ;;  %vm2654_vm15 = vcmask 123904  }
 0x85e   : > { %v2642_v7 = vand.u32 127, %v2641_v3 }
 0x860   : > { %v2644_v9 = vadd.s32 4294967288, %v2642_v7 }
 0x864   : > { %2631 = vadd.xlane.f32.xlu1 %v2616_v60  ;;  %2627 = vadd.xlane.f32.xlu0 %v2614_v38 }
 0x8cf   : > { %v2630_v63 = vpop.xlane.xlu1 %2629  ;;  %v2626_v17 = vpop.xlane.xlu0 %2625 }
 0x8d0   : > { %v2635_v56 = vmul.f32 %v2630_v63, %v4756_v23  ;;  %v2633_v8 = vmul.f32 %v2626_v17, %v4756_v23 }
 0x8d2   : > { %v2648_v24 = vperm.slane %v2635_v56, %v2642_v7  ;;  %v2643_v26 = vperm.slane %v2633_v8, %v2642_v7 }
 0x8d7   : > { %v2632_v36 = vpop.xlane.xlu1 %2631  ;;  %v2628_v10 = vpop.xlane.xlu0 %2627 }
 0x8d8   : > { %v2636_v47 = vmul.f32 %v2632_v36, %v4756_v23  ;;  %v2634_v18 = vmul.f32 %v2628_v10, %v4756_v23 }
 0x8da   : > { %v2649_v16 = vperm.slane %v2636_v47, %v2644_v9  ;;  %v2645_v21 = vperm.slane %v2634_v18, %v2644_v9 }
 0x8dc   : > { %v2650_v50 = vsel %vm2646_vm13, %v2649_v16, %v2648_v24  ;;  %v2647_v22 = vsel %vm2646_vm13, %v2645_v21, %v2643_v26 }
 0x8dd   : > { %v2652_v0 = vsel %vm2651_vm14, %v2650_v50, %v2647_v22 }
 0x8de   : > { %2655 = vst.msk [vmem:[#allocation21] sm:$0x3] %vm2654_vm15, %v2652_v0 }
 0x8df PF: > { %p3372_p4 = scmp.eq.s32.totalorder %s4279_s23, 2  ;;  %s4968_s22 = sld [smem:[#allocation41_spill]] }
 0x8e0   : > { %s4091_s14 = smov [#allocation21]  }
 0x8e1   : > { %s2664_s17 = sshll.u32 %s4091_s14, 4  ;;  %s2665_s17 = int_to_ptr.vmem [resolvable:$true] %s2664_s17 }
 0x8e5   : > { %s2666_s0 = sshll.u32 %s4968_s22, 4  ;;  %s2667_s0 = int_to_ptr.hbm [resolvable:$true] %s2666_s0 }
 0x8e6   : > { %3331 = dma.vmem_to_hbm [thread:$0]  (%p3372_p4), %s2665_s17, 32, %s2667_s0, [#allocation5]  }
 0x8e7   : > { %4053 = dma.done.wait (%p3372_p4), [#allocation5], 32  }
 0x8e8   : > { %4055 = vsyncadd (%p3372_p4), [#allocation5], 4294967264 }
 0x8e9 PF: > { %s40_s30 = sadd.s32 1, %s4078_s30   ;;  %s4969_s10 = sld [smem:[#allocation29_spill]] }
 0x8ea   : > { %p37_p5 = scmp.ge.s32.totalorder %s40_s30, 5   ;;  %s4970_s27 = sld [smem:[#allocation32_spill]] }
 0x8eb   : > { %s4971_s23 = sld [smem:[#allocation31_spill]]  ;;  %s4972_s25 = smov %s4062_s26 }
 0x8ec   : > { %s4974_s28 = smov %s4074_s29 }
 0x8ed   :  { %39 = sbr.rel (!%p37_p5) target bundleno = 24 (0x18), region = 237 }
 0x8ef   : > { %s4973_s26 = smov %s4969_s10 }
 0x8f1   : > { %s4975_s29 = smov %s4971_s23 }
 0x8f2   :  { %2680 = vsyncpa [#allocation4], 1 }
 0x8f3   :  { %2682 = vsyncpa [#allocation4 + $0x1], 1 }
 0x8f4   :  { %2683 = vsyncpa [#allocation7], 1 }
 0x8f5   :  { %2685 = vsyncpa [#allocation7 + $0x1], 1 }
 0x8f6   :  { %2686 = vsyncpa [#allocation10], 1 }
 0x8f7   :  { %2688 = vsyncpa [#allocation10 + $0x1], 1 }
 0x8f8   :  { %2689 = vsyncpa [#allocation13], 1 }
 0x8f9   :  { %2691 = vsyncpa [#allocation13 + $0x1], 1 }
 0x8fa   :  { %2692 = vsyncpa [#allocation16], 1 }
 0x8fb   :  { %2694 = vsyncpa [#allocation16 + $0x1], 1 }
 0x8fc   :  { %2695 = vsyncpa [#allocation19], 1 }
 0x8fd   :  { %2697 = vsyncpa [#allocation19 + $0x1], 1 }
 0x8fe   :  { %2698 = vsyncpa [#allocation5], 1 }
 0x8ff   :  { %2700 = vsyncpa [#allocation5 + $0x1], 1 }

</bundles_post_ra>
